<compile_context>
chip_gen: v6e
topology: v6e:2x2x1
jax: 0.10.0
libtpu: 0.0.40
codegen_flags: <defaults>
</compile_context>

<pallas_src>
import functools

import numpy as np
import jax
import jax.numpy as jnp
from jax.experimental import pallas as pl
from jax.experimental.pallas import tpu as pltpu

INPUT_SIZE = 16
HIDDEN_SIZE = 32
EDGE_SIZE = 8
MAX_CHILDREN = 8
ROW_WIDTH = 128          # lane-dense state row: [c(32) | h(32) | zero pad(64)]


# ----------------------------------------------------------------------------
# Pallas kernel: the whole tree in one invocation, fori_loop over nodes.
# ----------------------------------------------------------------------------
def tree_lstm_kernel(child_idx_ref,   # SMEM (N*MC,) int32     (scalar prefetch)
                     x_ref,           # VMEM (N, INPUT)
                     ex_ref,          # VMEM (N*MC, H)  precomputed edge gates
                     wx_ref,          # VMEM (INPUT, 4H)  = [ioux | fx]
                     wh_ref,          # VMEM (H, 4H)      = [iouh | fh]
                     bcomb_ref,       # VMEM (1, 4H)      = bx + bh (folded)
                     state_ref,       # VMEM out (N+1, 128): [c|h|pad] rows
                     gather_scr,      # VMEM scratch (MC, 128)
                     *, num_nodes: int):
    H = HIDDEN_SIZE

    # Zero the whole state table once: establishes the dedicated all-zero
    # padding row (row num_nodes) that missing-children gathers point at.
    state_ref[...] = jnp.zeros_like(state_ref)

    # Hoist weight reads out of the node loop.
    wx = wx_ref[...]
    wh = wh_ref[...]
    bcomb = bcomb_ref[...]

    def node_step(node, carry):
        base = pl.multiple_of(node * MAX_CHILDREN, MAX_CHILDREN)

        # ---- gather children [c|h|pad] rows from the resident state table
        #      into scratch at static sublane offsets (no 8-way concat) ----
        for j in range(MAX_CHILDREN):
            cidx = child_idx_ref[base + j]
            gather_scr[pl.ds(j, 1), :] = state_ref[pl.ds(cidx, 1), :]
        cs = gather_scr[...]                               # (MC, 128)
        child_c = cs[:, 0:H]
        child_h = cs[:, H:2 * H]

        # ---- edge-gated child_h sum (ex hoisted out of the kernel) ----
        ex = ex_ref[pl.ds(base, MAX_CHILDREN), :]          # (MC, H)
        child_h_sum = jnp.sum(ex * child_h, axis=0, keepdims=True)        # (1, H)

        # ---- fused projections; biases folded into bcomb ----
        x = x_ref[pl.ds(node, 1), :]                       # (1, INPUT)
        xf = jnp.dot(x, wx, preferred_element_type=jnp.float32) + bcomb   # (1, 4H)
        h_lhs = jnp.concatenate([child_h_sum, child_h], axis=0)           # (MC+1, H)
        hf = jnp.dot(h_lhs, wh, preferred_element_type=jnp.float32)       # (MC+1, 4H)

        iou = xf[:, 0:3 * H] + hf[0:1, 0:3 * H]            # ioux(x)+iouh(sum)+biases
        i_g = jax.nn.sigmoid(iou[:, 0:H])
        o_g = jax.nn.sigmoid(iou[:, H:2 * H])
        u_g = jnp.tanh(iou[:, 2 * H:3 * H])

        # f = sigmoid(fh(child_h) + fx(x) + bfh + bfx), broadcast over children.
        f = jax.nn.sigmoid(hf[1:, 3 * H:4 * H] + xf[:, 3 * H:4 * H])      # (MC, H)

        c = i_g * u_g + jnp.sum(f * child_c, axis=0, keepdims=True)       # (1, H)
        h = o_g * jnp.tanh(c)                                             # (1, H)

        # Full-lane (unmasked) 128-wide row store: [c | h | zeros].
        row = jnp.concatenate(
            [c, h, jnp.zeros((1, ROW_WIDTH - 2 * H), jnp.float32)], axis=1)
        state_ref[pl.ds(node, 1), :] = row
        return carry

    jax.lax.fori_loop(0, num_nodes, node_step, 0,
                      unroll=True if num_nodes <= 32 else False)


# ----------------------------------------------------------------------------
# Builder: pallas_call + hoisted edge gate, per (num_nodes, use_edge).
# ----------------------------------------------------------------------------
@functools.lru_cache(maxsize=None)
def _build_fn(num_nodes: int, use_edge: bool):
    four_h = 4 * HIDDEN_SIZE
    n_slots = num_nodes * MAX_CHILDREN
    kernel = functools.partial(tree_lstm_kernel, num_nodes=num_nodes)

    grid_spec = pltpu.PrefetchScalarGridSpec(
        num_scalar_prefetch=1,
        grid=(1,),
        in_specs=[
            # full-array, constant index_map -> DMA'd once, VMEM-resident
            pl.BlockSpec((num_nodes, INPUT_SIZE), lambda i, cidx: (0, 0)),
            pl.BlockSpec((n_slots, HIDDEN_SIZE), lambda i, cidx: (0, 0)),
            pl.BlockSpec((INPUT_SIZE, four_h), lambda i, cidx: (0, 0)),
            pl.BlockSpec((HIDDEN_SIZE, four_h), lambda i, cidx: (0, 0)),
            pl.BlockSpec((1, four_h), lambda i, cidx: (0, 0)),
        ],
        out_specs=pl.BlockSpec((num_nodes + 1, ROW_WIDTH), lambda i, cidx: (0, 0)),
        scratch_shapes=[pltpu.VMEM((MAX_CHILDREN, ROW_WIDTH), jnp.float32)],
    )

    # VMEM budget (v7x has 64 MiB physical / 32 MiB default scoped): only
    # override the scoped limit when a big tree actually needs it.
    resident_bytes = ((num_nodes + 1) * ROW_WIDTH * 4
                      + num_nodes * INPUT_SIZE * 4
                      + n_slots * HIDDEN_SIZE * 4
                      + (INPUT_SIZE + HIDDEN_SIZE + 1) * four_h * 4
                      + MAX_CHILDREN * ROW_WIDTH * 4)
    cp_kwargs = dict(dimension_semantics=("arbitrary",))
    needed = 2 * resident_bytes + (1 << 20)
    if needed > (30 << 20):
        cp_kwargs["vmem_limit_bytes"] = min(needed, 100 << 20)

    call = pl.pallas_call(
        kernel,
        grid_spec=grid_spec,
        out_shape=jax.ShapeDtypeStruct((num_nodes + 1, ROW_WIDTH), jnp.float32),
        compiler_params=pltpu.CompilerParams(**cp_kwargs),
    )

    def fn(child_idx, x, cw_flat, wex, bex, w_x, w_h, b_comb):
        if use_edge:
            # Hoisted edge gate: one (N*MC, EDGE)@(EDGE, H) batch matmul,
            # entirely off the per-node serial dependency chain.
            ex = jax.nn.sigmoid(cw_flat @ wex + bex)
        else:
            # ones -> plain child_h sum (padded rows are zero anyway).
            ex = jnp.ones((n_slots, HIDDEN_SIZE), jnp.float32)
        return call(child_idx, x, ex, w_x, w_h, b_comb)

    return jax.jit(fn)


# ----------------------------------------------------------------------------
# Tree glue
# ----------------------------------------------------------------------------
class Tree:
    def __init__(self, idx, children=()):
        self.idx = idx
        self.children = list(children)
        self.num_children = len(self.children)
        self.state = None


def pallas_tree_lstm(tree, inputs, edge_inputs, params):
    """One pallas_call for the whole tree.  inputs: (num_nodes, 1, INPUT)."""
    use_edge = edge_inputs is not None

    # Post-order traversal: children appear before their parent.
    order = []

    def _post(t):
        for ch in t.children:
            _post(ch)
        order.append(t)

    _post(tree)
    num_nodes = len(order)
    pos = {id(t): p for p, t in enumerate(order)}
    zero_row = num_nodes  # dedicated all-zero padding row in the state table

    child_idx = np.full((num_nodes * MAX_CHILDREN,), zero_row, dtype=np.int32)
    node_ids = np.zeros((num_nodes,), dtype=np.int32)
    cw_np = np.zeros((num_nodes * MAX_CHILDREN, EDGE_SIZE), dtype=np.float32)
    edge_np = np.asarray(edge_inputs, dtype=np.float32) if use_edge else None

    for p, t in enumerate(order):
        if t.num_children > MAX_CHILDREN:
            raise ValueError(
                f"node {t.idx} has {t.num_children} children > MAX_CHILDREN={MAX_CHILDREN}")
        node_ids[p] = t.idx
        for j, ch in enumerate(t.children):
            child_idx[p * MAX_CHILDREN + j] = pos[id(ch)]
            if use_edge:
                cw_np[p * MAX_CHILDREN + j] = edge_np[ch.idx]

    x_topo = jnp.asarray(inputs)[jnp.asarray(node_ids)].reshape(
        num_nodes, INPUT_SIZE)                                 # (N, INPUT)
    cw_flat = jnp.asarray(cw_np)                               # (N*MC, EDGE)
    child_idx = jnp.asarray(child_idx)                         # (N*MC,) int32

    (wex, bex, wioux, bioux, wiouh, biouh, wfx, bfx, wfh, bfh) = params
    w_x = jnp.concatenate([wioux, wfx], axis=1)                # (INPUT, 128)
    w_h = jnp.concatenate([wiouh, wfh], axis=1)                # (HIDDEN, 128)
    b_comb = (jnp.concatenate([bioux, bfx], axis=1)
              + jnp.concatenate([biouh, bfh], axis=1))         # (1, 128), folded once

    fn = _build_fn(num_nodes, use_edge)
    state = fn(child_idx, x_topo, cw_flat, wex, bex, w_x, w_h, b_comb)

    H = HIDDEN_SIZE
    for p, t in enumerate(order):
        t.state = (state[p:p + 1, 0:H], state[p:p + 1, H:2 * H])
    return tree.state


# ----------------------------------------------------------------------------
# Pure-JAX reference mirroring the PyTorch module exactly (for correctness)
# ----------------------------------------------------------------------------
def _ref_node_forward(x, child_c, child_h, child_w, params):
    (wex, bex, wioux, bioux, wiouh, biouh, wfx, bfx, wfh, bfh) = params
    if child_w is None:
        chs = jnp.sum(child_h, axis=0, keepdims=True)
    else:
        ex = jax.nn.sigmoid(child_w @ wex + bex)
        chs = jnp.sum(ex * child_h, axis=0, keepdims=True)
    iou = x @ wioux + bioux + chs @ wiouh + biouh
    H = HIDDEN_SIZE
    i = jax.nn.sigmoid(iou[:, :H])
    o = jax.nn.sigmoid(iou[:, H:2 * H])
    u = jnp.tanh(iou[:, 2 * H:])
    f = jax.nn.sigmoid(child_h @ wfh + bfh + (x @ wfx + bfx))
    c = i * u + jnp.sum(f * child_c, axis=0, keepdims=True)
    h = o * jnp.tanh(c)
    return c, h


def ref_tree_forward(tree, inputs, edge_inputs, params):
    for ch in tree.children:
        ref_tree_forward(ch, inputs, edge_inputs, params)
    if tree.num_children == 0:
        child_c = jnp.zeros((1, HIDDEN_SIZE), jnp.float32)
        child_h = jnp.zeros((1, HIDDEN_SIZE), jnp.float32)
        child_w = (jnp.zeros((1, EDGE_SIZE), jnp.float32)
                   if edge_inputs is not None else None)
    else:
        child_c = jnp.concatenate([c.state[0] for c in tree.children], axis=0)
        child_h = jnp.concatenate([c.state[1] for c in tree.children], axis=0)
        child_w = (jnp.stack([edge_inputs[c.idx] for c in tree.children], axis=0)
                   if edge_inputs is not None else None)
    tree.state = _ref_node_forward(inputs[tree.idx], child_c, child_h, child_w, params)
    return tree.state


def init_linear(key, in_f, out_f):
    # matches torch.nn.Linear default init: U(-1/sqrt(in), 1/sqrt(in)); stored transposed.
    k = 1.0 / float(in_f) ** 0.5
    kw, kb = jax.random.split(key)
    w = jax.random.uniform(kw, (in_f, out_f), jnp.float32, -k, k)
    b = jax.random.uniform(kb, (1, out_f), jnp.float32, -k, k)
    return w, b


def make_tree():
    # 5-node tree:  0 -> (1 -> (3, 4), 2)
    return Tree(0, [Tree(1, [Tree(3), Tree(4)]), Tree(2)])


if __name__ == "__main__":
    key = jax.random.PRNGKey(0)
    keys = jax.random.split(key, 7)

    wex, bex = init_linear(keys[0], EDGE_SIZE, HIDDEN_SIZE)
    wioux, bioux = init_linear(keys[1], INPUT_SIZE, 3 * HIDDEN_SIZE)
    wiouh, biouh = init_linear(keys[2], HIDDEN_SIZE, 3 * HIDDEN_SIZE)
    wfx, bfx = init_linear(keys[3], INPUT_SIZE, HIDDEN_SIZE)
    wfh, bfh = init_linear(keys[4], HIDDEN_SIZE, HIDDEN_SIZE)
    params = (wex, bex, wioux, bioux, wiouh, biouh, wfx, bfx, wfh, bfh)

    num_nodes = 5
    inputs = jax.random.normal(keys[5], (num_nodes, 1, INPUT_SIZE), jnp.float32)
    edge_inputs = jax.random.normal(keys[6], (num_nodes, EDGE_SIZE), jnp.float32)

    # ---- edge-gated path ----
    tree = make_tree()
    c_root, h_root = pallas_tree_lstm(tree, inputs, edge_inputs, params)
    jax.block_until_ready((c_root, h_root))

    ref_tree = make_tree()
    c_ref, h_ref = ref_tree_forward(ref_tree, inputs, edge_inputs, params)
    assert jnp.allclose(c_root, c_ref, atol=1e-5), "edge path: c mismatch"
    assert jnp.allclose(h_root, h_ref, atol=1e-5), "edge path: h mismatch"

    # per-node check (post-order traversal is deterministic, so orders match)
    def _collect(t, acc):
        for ch in t.children:
            _collect(ch, acc)
        acc.append(t)
        return acc
    for a, b in zip(_collect(tree, []), _collect(ref_tree, [])):
        assert jnp.allclose(a.state[0], b.state[0], atol=1e-5), "node c mismatch"
        assert jnp.allclose(a.state[1], b.state[1], atol=1e-5), "node h mismatch"

    # ---- edge_inputs=None path (plain child_h sum, as in the PyTorch module) ----
    tree2 = make_tree()
    c2, h2 = pallas_tree_lstm(tree2, inputs, None, params)
    jax.block_until_ready((c2, h2))
    ref_tree2 = make_tree()
    c2_ref, h2_ref = ref_tree_forward(ref_tree2, inputs, None, params)
    assert jnp.allclose(c2, c2_ref, atol=1e-5), "no-edge path: c mismatch"
    assert jnp.allclose(h2, h2_ref, atol=1e-5), "no-edge path: h mismatch"

    print("KERNEL_OK")
</pallas_src>

<mosaic_0001>
module attributes {stable_mosaic.version = 11 : i64} {
  func.func @tree_lstm_kernel(%arg0: i32, %arg1: memref<40xi32, #tpu.memory_space<smem>>, %arg2: memref<5x16xf32, #tpu.memory_space<vmem>>, %arg3: memref<40x32xf32, #tpu.memory_space<vmem>>, %arg4: memref<16x128xf32, #tpu.memory_space<vmem>>, %arg5: memref<32x128xf32, #tpu.memory_space<vmem>>, %arg6: memref<1x128xf32, #tpu.memory_space<vmem>>, %arg7: memref<6x128xf32, #tpu.memory_space<vmem>>, %arg8: memref<8x128xf32, #tpu.memory_space<vmem>>) attributes {dimension_semantics = [#tpu.dimension_semantics<arbitrary>], iteration_bounds = array<i64: 1>, scalar_prefetch = 1 : i64, scratch_operands = 1 : i64, tpu.core_type = #tpu.core_type<tc>, window_params = [{pipeline_mode = #tpu.pipeline_mode<synchronous>, transform_indices = @transform_0, window_bounds = array<i64: 5, 16>}, {pipeline_mode = #tpu.pipeline_mode<synchronous>, transform_indices = @transform_1, window_bounds = array<i64: 40, 32>}, {pipeline_mode = #tpu.pipeline_mode<synchronous>, transform_indices = @transform_2, window_bounds = array<i64: 16, 128>}, {pipeline_mode = #tpu.pipeline_mode<synchronous>, transform_indices = @transform_3, window_bounds = array<i64: 32, 128>}, {pipeline_mode = #tpu.pipeline_mode<synchronous>, transform_indices = @transform_4, window_bounds = array<i64: 1, 128>}, {pipeline_mode = #tpu.pipeline_mode<synchronous>, transform_indices = @transform_5, window_bounds = array<i64: 6, 128>}]} {
    %cst = arith.constant 0.000000e+00 : f32
    %0 = vector.broadcast %cst : f32 to vector<6x128xf32>
    %c0 = arith.constant 0 : index
    %c0_0 = arith.constant 0 : index
    %1 = vector.load %arg7[%c0, %c0_0] : memref<6x128xf32, #tpu.memory_space<vmem>>, vector<6x128xf32>
    tpu.vector_store %arg7[%c0, %c0_0], %0 {strides = array<i32>} : memref<6x128xf32, #tpu.memory_space<vmem>>, vector<6x128xf32>,
    %c0_1 = arith.constant 0 : index
    %c0_2 = arith.constant 0 : index
    %2 = vector.load %arg4[%c0_1, %c0_2] : memref<16x128xf32, #tpu.memory_space<vmem>>, vector<16x128xf32>
    %c0_3 = arith.constant 0 : index
    %c0_4 = arith.constant 0 : index
    %3 = vector.load %arg5[%c0_3, %c0_4] : memref<32x128xf32, #tpu.memory_space<vmem>>, vector<32x128xf32>
    %c0_5 = arith.constant 0 : index
    %c0_6 = arith.constant 0 : index
    %4 = vector.load %arg6[%c0_5, %c0_6] : memref<1x128xf32, #tpu.memory_space<vmem>>, vector<1x128xf32>
    %c0_i32 = arith.constant 0 : i32
    %c8_i32 = arith.constant 8 : i32
    %5 = arith.muli %c0_i32, %c8_i32 : i32
    %6 = tpu.assume_multiple %5, 8 : i32
    %c0_i32_7 = arith.constant 0 : i32
    %7 = arith.addi %6, %c0_i32_7 : i32
    %8 = arith.index_cast %7 : i32 to index
    %9 = memref.load %arg1[%8] : memref<40xi32, #tpu.memory_space<smem>>
    %10 = arith.index_cast %9 : i32 to index
    %c0_8 = arith.constant 0 : index
    %11 = vector.load %arg7[%10, %c0_8] : memref<6x128xf32, #tpu.memory_space<vmem>>, vector<1x128xf32>
    %c0_9 = arith.constant 0 : index
    %c0_10 = arith.constant 0 : index
    %12 = vector.load %arg8[%c0_9, %c0_10] : memref<8x128xf32, #tpu.memory_space<vmem>>, vector<1x128xf32>
    tpu.vector_store %arg8[%c0_9, %c0_10], %11 {strides = array<i32>} : memref<8x128xf32, #tpu.memory_space<vmem>>, vector<1x128xf32>,
    %c1_i32 = arith.constant 1 : i32
    %13 = arith.addi %6, %c1_i32 : i32
    %14 = arith.index_cast %13 : i32 to index
    %15 = memref.load %arg1[%14] : memref<40xi32, #tpu.memory_space<smem>>
    %16 = arith.index_cast %15 : i32 to index
    %c0_11 = arith.constant 0 : index
    %17 = vector.load %arg7[%16, %c0_11] : memref<6x128xf32, #tpu.memory_space<vmem>>, vector<1x128xf32>
    %c1 = arith.constant 1 : index
    %c0_12 = arith.constant 0 : index
    %18 = vector.load %arg8[%c1, %c0_12] : memref<8x128xf32, #tpu.memory_space<vmem>>, vector<1x128xf32>
    tpu.vector_store %arg8[%c1, %c0_12], %17 {strides = array<i32>} : memref<8x128xf32, #tpu.memory_space<vmem>>, vector<1x128xf32>,
    %c2_i32 = arith.constant 2 : i32
    %19 = arith.addi %6, %c2_i32 : i32
    %20 = arith.index_cast %19 : i32 to index
    %21 = memref.load %arg1[%20] : memref<40xi32, #tpu.memory_space<smem>>
    %22 = arith.index_cast %21 : i32 to index
    %c0_13 = arith.constant 0 : index
    %23 = vector.load %arg7[%22, %c0_13] : memref<6x128xf32, #tpu.memory_space<vmem>>, vector<1x128xf32>
    %c2 = arith.constant 2 : index
    %c0_14 = arith.constant 0 : index
    %24 = vector.load %arg8[%c2, %c0_14] : memref<8x128xf32, #tpu.memory_space<vmem>>, vector<1x128xf32>
    tpu.vector_store %arg8[%c2, %c0_14], %23 {strides = array<i32>} : memref<8x128xf32, #tpu.memory_space<vmem>>, vector<1x128xf32>,
    %c3_i32 = arith.constant 3 : i32
    %25 = arith.addi %6, %c3_i32 : i32
    %26 = arith.index_cast %25 : i32 to index
    %27 = memref.load %arg1[%26] : memref<40xi32, #tpu.memory_space<smem>>
    %28 = arith.index_cast %27 : i32 to index
    %c0_15 = arith.constant 0 : index
    %29 = vector.load %arg7[%28, %c0_15] : memref<6x128xf32, #tpu.memory_space<vmem>>, vector<1x128xf32>
    %c3 = arith.constant 3 : index
    %c0_16 = arith.constant 0 : index
    %30 = vector.load %arg8[%c3, %c0_16] : memref<8x128xf32, #tpu.memory_space<vmem>>, vector<1x128xf32>
    tpu.vector_store %arg8[%c3, %c0_16], %29 {strides = array<i32>} : memref<8x128xf32, #tpu.memory_space<vmem>>, vector<1x128xf32>,
    %c4_i32 = arith.constant 4 : i32
    %31 = arith.addi %6, %c4_i32 : i32
    %32 = arith.index_cast %31 : i32 to index
    %33 = memref.load %arg1[%32] : memref<40xi32, #tpu.memory_space<smem>>
    %34 = arith.index_cast %33 : i32 to index
    %c0_17 = arith.constant 0 : index
    %35 = vector.load %arg7[%34, %c0_17] : memref<6x128xf32, #tpu.memory_space<vmem>>, vector<1x128xf32>
    %c4 = arith.constant 4 : index
    %c0_18 = arith.constant 0 : index
    %36 = vector.load %arg8[%c4, %c0_18] : memref<8x128xf32, #tpu.memory_space<vmem>>, vector<1x128xf32>
    tpu.vector_store %arg8[%c4, %c0_18], %35 {strides = array<i32>} : memref<8x128xf32, #tpu.memory_space<vmem>>, vector<1x128xf32>,
    %c5_i32 = arith.constant 5 : i32
    %37 = arith.addi %6, %c5_i32 : i32
    %38 = arith.index_cast %37 : i32 to index
    %39 = memref.load %arg1[%38] : memref<40xi32, #tpu.memory_space<smem>>
    %40 = arith.index_cast %39 : i32 to index
    %c0_19 = arith.constant 0 : index
    %41 = vector.load %arg7[%40, %c0_19] : memref<6x128xf32, #tpu.memory_space<vmem>>, vector<1x128xf32>
    %c5 = arith.constant 5 : index
    %c0_20 = arith.constant 0 : index
    %42 = vector.load %arg8[%c5, %c0_20] : memref<8x128xf32, #tpu.memory_space<vmem>>, vector<1x128xf32>
    tpu.vector_store %arg8[%c5, %c0_20], %41 {strides = array<i32>} : memref<8x128xf32, #tpu.memory_space<vmem>>, vector<1x128xf32>,
    %c6_i32 = arith.constant 6 : i32
    %43 = arith.addi %6, %c6_i32 : i32
    %44 = arith.index_cast %43 : i32 to index
    %45 = memref.load %arg1[%44] : memref<40xi32, #tpu.memory_space<smem>>
    %46 = arith.index_cast %45 : i32 to index
    %c0_21 = arith.constant 0 : index
    %47 = vector.load %arg7[%46, %c0_21] : memref<6x128xf32, #tpu.memory_space<vmem>>, vector<1x128xf32>
    %c6 = arith.constant 6 : index
    %c0_22 = arith.constant 0 : index
    %48 = vector.load %arg8[%c6, %c0_22] : memref<8x128xf32, #tpu.memory_space<vmem>>, vector<1x128xf32>
    tpu.vector_store %arg8[%c6, %c0_22], %47 {strides = array<i32>} : memref<8x128xf32, #tpu.memory_space<vmem>>, vector<1x128xf32>,
    %c7_i32 = arith.constant 7 : i32
    %49 = arith.addi %6, %c7_i32 : i32
    %50 = arith.index_cast %49 : i32 to index
    %51 = memref.load %arg1[%50] : memref<40xi32, #tpu.memory_space<smem>>
    %52 = arith.index_cast %51 : i32 to index
    %c0_23 = arith.constant 0 : index
    %53 = vector.load %arg7[%52, %c0_23] : memref<6x128xf32, #tpu.memory_space<vmem>>, vector<1x128xf32>
    %c7 = arith.constant 7 : index
    %c0_24 = arith.constant 0 : index
    %54 = vector.load %arg8[%c7, %c0_24] : memref<8x128xf32, #tpu.memory_space<vmem>>, vector<1x128xf32>
    tpu.vector_store %arg8[%c7, %c0_24], %53 {strides = array<i32>} : memref<8x128xf32, #tpu.memory_space<vmem>>, vector<1x128xf32>,
    %c0_25 = arith.constant 0 : index
    %c0_26 = arith.constant 0 : index
    %55 = vector.load %arg8[%c0_25, %c0_26] : memref<8x128xf32, #tpu.memory_space<vmem>>, vector<8x128xf32>
    %56 = vector.extract_strided_slice %55 {offsets = [0, 0], sizes = [8, 32], strides = [1, 1]} : vector<8x128xf32> to vector<8x32xf32>
    %57 = vector.extract_strided_slice %55 {offsets = [0, 32], sizes = [8, 32], strides = [1, 1]} : vector<8x128xf32> to vector<8x32xf32>
    %58 = arith.index_cast %6 : i32 to index
    %c0_27 = arith.constant 0 : index
    %59 = vector.load %arg3[%58, %c0_27] : memref<40x32xf32, #tpu.memory_space<vmem>>, vector<8x32xf32>
    %60 = arith.mulf %59, %57 : vector<8x32xf32>
    %cst_28 = arith.constant dense<0.000000e+00> : vector<32xf32>
    %61 = vector.multi_reduction <add>, %60, %cst_28 [0] : vector<8x32xf32> to vector<32xf32>
    %62 = vector.shape_cast %61 : vector<32xf32> to vector<1x32xf32>
    %63 = arith.index_cast %c0_i32 : i32 to index
    %c0_29 = arith.constant 0 : index
    %64 = vector.load %arg2[%63, %c0_29] : memref<5x16xf32, #tpu.memory_space<vmem>>, vector<1x16xf32>
    %cst_30 = arith.constant dense<0.000000e+00> : vector<1x128xf32>
    %65 = tpu.matmul %64, %2, %cst_30 {dimension_numbers = #tpu.dot_dimension_numbers<[1], [0], [0], [1], [0, 0, 1, 1], [], []>} : vector<1x16xf32>, vector<16x128xf32>, vector<1x128xf32> -> vector<1x128xf32>
    %66 = arith.addf %65, %4 : vector<1x128xf32>
    %67 = tpu.concatenate %62, %57 in 0 : vector<1x32xf32>, vector<8x32xf32> -> vector<9x32xf32>
    %cst_31 = arith.constant dense<0.000000e+00> : vector<9x128xf32>
    %68 = tpu.matmul %67, %3, %cst_31 {dimension_numbers = #tpu.dot_dimension_numbers<[1], [0], [0], [1], [0, 0, 1, 1], [], []>} : vector<9x32xf32>, vector<32x128xf32>, vector<9x128xf32> -> vector<9x128xf32>
    %69 = vector.extract_strided_slice %66 {offsets = [0, 0], sizes = [1, 96], strides = [1, 1]} : vector<1x128xf32> to vector<1x96xf32>
    %70 = vector.extract_strided_slice %68 {offsets = [0, 0], sizes = [1, 96], strides = [1, 1]} : vector<9x128xf32> to vector<1x96xf32>
    %71 = arith.addf %69, %70 : vector<1x96xf32>
    %72 = vector.extract_strided_slice %71 {offsets = [0, 0], sizes = [1, 32], strides = [1, 1]} : vector<1x96xf32> to vector<1x32xf32>
    %73 = arith.negf %72 : vector<1x32xf32>
    %74 = math.exp %73 : vector<1x32xf32>
    %cst_32 = arith.constant 1.000000e+00 : f32
    %75 = vector.broadcast %cst_32 : f32 to vector<1x32xf32>
    %76 = arith.addf %75, %74 : vector<1x32xf32>
    %77 = arith.divf %75, %76 : vector<1x32xf32>
    %78 = vector.extract_strided_slice %71 {offsets = [0, 32], sizes = [1, 32], strides = [1, 1]} : vector<1x96xf32> to vector<1x32xf32>
    %79 = arith.negf %78 : vector<1x32xf32>
    %80 = math.exp %79 : vector<1x32xf32>
    %cst_33 = arith.constant 1.000000e+00 : f32
    %81 = vector.broadcast %cst_33 : f32 to vector<1x32xf32>
    %82 = arith.addf %81, %80 : vector<1x32xf32>
    %83 = arith.divf %81, %82 : vector<1x32xf32>
    %84 = vector.extract_strided_slice %71 {offsets = [0, 64], sizes = [1, 32], strides = [1, 1]} : vector<1x96xf32> to vector<1x32xf32>
    %85 = math.tanh %84 : vector<1x32xf32>
    %86 = vector.extract_strided_slice %68 {offsets = [1, 96], sizes = [8, 32], strides = [1, 1]} : vector<9x128xf32> to vector<8x32xf32>
    %87 = vector.extract_strided_slice %66 {offsets = [0, 96], sizes = [1, 32], strides = [1, 1]} : vector<1x128xf32> to vector<1x32xf32>
    %88 = vector.broadcast %87 : vector<1x32xf32> to vector<8x32xf32>
    %89 = arith.addf %86, %88 : vector<8x32xf32>
    %90 = arith.negf %89 : vector<8x32xf32>
    %91 = math.exp %90 : vector<8x32xf32>
    %cst_34 = arith.constant 1.000000e+00 : f32
    %92 = vector.broadcast %cst_34 : f32 to vector<8x32xf32>
    %93 = arith.addf %92, %91 : vector<8x32xf32>
    %94 = arith.divf %92, %93 : vector<8x32xf32>
    %95 = arith.mulf %77, %85 : vector<1x32xf32>
    %96 = arith.mulf %94, %56 : vector<8x32xf32>
    %cst_35 = arith.constant dense<0.000000e+00> : vector<32xf32>
    %97 = vector.multi_reduction <add>, %96, %cst_35 [0] : vector<8x32xf32> to vector<32xf32>
    %98 = vector.shape_cast %97 : vector<32xf32> to vector<1x32xf32>
    %99 = arith.addf %95, %98 : vector<1x32xf32>
    %100 = math.tanh %99 : vector<1x32xf32>
    %101 = arith.mulf %83, %100 : vector<1x32xf32>
    %cst_36 = arith.constant 0.000000e+00 : f32
    %102 = vector.broadcast %cst_36 : f32 to vector<1x64xf32>
    %103 = tpu.concatenate %99, %101, %102 in 1 : vector<1x32xf32>, vector<1x32xf32>, vector<1x64xf32> -> vector<1x128xf32>
    %104 = arith.index_cast %c0_i32 : i32 to index
    %c0_37 = arith.constant 0 : index
    %105 = vector.load %arg7[%104, %c0_37] : memref<6x128xf32, #tpu.memory_space<vmem>>, vector<1x128xf32>
    tpu.vector_store %arg7[%104, %c0_37], %103 {strides = array<i32>} : memref<6x128xf32, #tpu.memory_space<vmem>>, vector<1x128xf32>,
    %c1_i32_38 = arith.constant 1 : i32
    %c8_i32_39 = arith.constant 8 : i32
    %106 = arith.muli %c1_i32_38, %c8_i32_39 : i32
    %107 = tpu.assume_multiple %106, 8 : i32
    %c0_i32_40 = arith.constant 0 : i32
    %108 = arith.addi %107, %c0_i32_40 : i32
    %109 = arith.index_cast %108 : i32 to index
    %110 = memref.load %arg1[%109] : memref<40xi32, #tpu.memory_space<smem>>
    %111 = arith.index_cast %110 : i32 to index
    %c0_41 = arith.constant 0 : index
    %112 = vector.load %arg7[%111, %c0_41] : memref<6x128xf32, #tpu.memory_space<vmem>>, vector<1x128xf32>
    %c0_42 = arith.constant 0 : index
    %c0_43 = arith.constant 0 : index
    %113 = vector.load %arg8[%c0_42, %c0_43] : memref<8x128xf32, #tpu.memory_space<vmem>>, vector<1x128xf32>
    tpu.vector_store %arg8[%c0_42, %c0_43], %112 {strides = array<i32>} : memref<8x128xf32, #tpu.memory_space<vmem>>, vector<1x128xf32>,
    %c1_i32_44 = arith.constant 1 : i32
    %114 = arith.addi %107, %c1_i32_44 : i32
    %115 = arith.index_cast %114 : i32 to index
    %116 = memref.load %arg1[%115] : memref<40xi32, #tpu.memory_space<smem>>
    %117 = arith.index_cast %116 : i32 to index
    %c0_45 = arith.constant 0 : index
    %118 = vector.load %arg7[%117, %c0_45] : memref<6x128xf32, #tpu.memory_space<vmem>>, vector<1x128xf32>
    %c1_46 = arith.constant 1 : index
    %c0_47 = arith.constant 0 : index
    %119 = vector.load %arg8[%c1_46, %c0_47] : memref<8x128xf32, #tpu.memory_space<vmem>>, vector<1x128xf32>
    tpu.vector_store %arg8[%c1_46, %c0_47], %118 {strides = array<i32>} : memref<8x128xf32, #tpu.memory_space<vmem>>, vector<1x128xf32>,
    %c2_i32_48 = arith.constant 2 : i32
    %120 = arith.addi %107, %c2_i32_48 : i32
    %121 = arith.index_cast %120 : i32 to index
    %122 = memref.load %arg1[%121] : memref<40xi32, #tpu.memory_space<smem>>
    %123 = arith.index_cast %122 : i32 to index
    %c0_49 = arith.constant 0 : index
    %124 = vector.load %arg7[%123, %c0_49] : memref<6x128xf32, #tpu.memory_space<vmem>>, vector<1x128xf32>
    %c2_50 = arith.constant 2 : index
    %c0_51 = arith.constant 0 : index
    %125 = vector.load %arg8[%c2_50, %c0_51] : memref<8x128xf32, #tpu.memory_space<vmem>>, vector<1x128xf32>
    tpu.vector_store %arg8[%c2_50, %c0_51], %124 {strides = array<i32>} : memref<8x128xf32, #tpu.memory_space<vmem>>, vector<1x128xf32>,
    %c3_i32_52 = arith.constant 3 : i32
    %126 = arith.addi %107, %c3_i32_52 : i32
    %127 = arith.index_cast %126 : i32 to index
    %128 = memref.load %arg1[%127] : memref<40xi32, #tpu.memory_space<smem>>
    %129 = arith.index_cast %128 : i32 to index
    %c0_53 = arith.constant 0 : index
    %130 = vector.load %arg7[%129, %c0_53] : memref<6x128xf32, #tpu.memory_space<vmem>>, vector<1x128xf32>
    %c3_54 = arith.constant 3 : index
    %c0_55 = arith.constant 0 : index
    %131 = vector.load %arg8[%c3_54, %c0_55] : memref<8x128xf32, #tpu.memory_space<vmem>>, vector<1x128xf32>
    tpu.vector_store %arg8[%c3_54, %c0_55], %130 {strides = array<i32>} : memref<8x128xf32, #tpu.memory_space<vmem>>, vector<1x128xf32>,
    %c4_i32_56 = arith.constant 4 : i32
    %132 = arith.addi %107, %c4_i32_56 : i32
    %133 = arith.index_cast %132 : i32 to index
    %134 = memref.load %arg1[%133] : memref<40xi32, #tpu.memory_space<smem>>
    %135 = arith.index_cast %134 : i32 to index
    %c0_57 = arith.constant 0 : index
    %136 = vector.load %arg7[%135, %c0_57] : memref<6x128xf32, #tpu.memory_space<vmem>>, vector<1x128xf32>
    %c4_58 = arith.constant 4 : index
    %c0_59 = arith.constant 0 : index
    %137 = vector.load %arg8[%c4_58, %c0_59] : memref<8x128xf32, #tpu.memory_space<vmem>>, vector<1x128xf32>
    tpu.vector_store %arg8[%c4_58, %c0_59], %136 {strides = array<i32>} : memref<8x128xf32, #tpu.memory_space<vmem>>, vector<1x128xf32>,
    %c5_i32_60 = arith.constant 5 : i32
    %138 = arith.addi %107, %c5_i32_60 : i32
    %139 = arith.index_cast %138 : i32 to index
    %140 = memref.load %arg1[%139] : memref<40xi32, #tpu.memory_space<smem>>
    %141 = arith.index_cast %140 : i32 to index
    %c0_61 = arith.constant 0 : index
    %142 = vector.load %arg7[%141, %c0_61] : memref<6x128xf32, #tpu.memory_space<vmem>>, vector<1x128xf32>
    %c5_62 = arith.constant 5 : index
    %c0_63 = arith.constant 0 : index
    %143 = vector.load %arg8[%c5_62, %c0_63] : memref<8x128xf32, #tpu.memory_space<vmem>>, vector<1x128xf32>
    tpu.vector_store %arg8[%c5_62, %c0_63], %142 {strides = array<i32>} : memref<8x128xf32, #tpu.memory_space<vmem>>, vector<1x128xf32>,
    %c6_i32_64 = arith.constant 6 : i32
    %144 = arith.addi %107, %c6_i32_64 : i32
    %145 = arith.index_cast %144 : i32 to index
    %146 = memref.load %arg1[%145] : memref<40xi32, #tpu.memory_space<smem>>
    %147 = arith.index_cast %146 : i32 to index
    %c0_65 = arith.constant 0 : index
    %148 = vector.load %arg7[%147, %c0_65] : memref<6x128xf32, #tpu.memory_space<vmem>>, vector<1x128xf32>
    %c6_66 = arith.constant 6 : index
    %c0_67 = arith.constant 0 : index
    %149 = vector.load %arg8[%c6_66, %c0_67] : memref<8x128xf32, #tpu.memory_space<vmem>>, vector<1x128xf32>
    tpu.vector_store %arg8[%c6_66, %c0_67], %148 {strides = array<i32>} : memref<8x128xf32, #tpu.memory_space<vmem>>, vector<1x128xf32>,
    %c7_i32_68 = arith.constant 7 : i32
    %150 = arith.addi %107, %c7_i32_68 : i32
    %151 = arith.index_cast %150 : i32 to index
    %152 = memref.load %arg1[%151] : memref<40xi32, #tpu.memory_space<smem>>
    %153 = arith.index_cast %152 : i32 to index
    %c0_69 = arith.constant 0 : index
    %154 = vector.load %arg7[%153, %c0_69] : memref<6x128xf32, #tpu.memory_space<vmem>>, vector<1x128xf32>
    %c7_70 = arith.constant 7 : index
    %c0_71 = arith.constant 0 : index
    %155 = vector.load %arg8[%c7_70, %c0_71] : memref<8x128xf32, #tpu.memory_space<vmem>>, vector<1x128xf32>
    tpu.vector_store %arg8[%c7_70, %c0_71], %154 {strides = array<i32>} : memref<8x128xf32, #tpu.memory_space<vmem>>, vector<1x128xf32>,
    %c0_72 = arith.constant 0 : index
    %c0_73 = arith.constant 0 : index
    %156 = vector.load %arg8[%c0_72, %c0_73] : memref<8x128xf32, #tpu.memory_space<vmem>>, vector<8x128xf32>
    %157 = vector.extract_strided_slice %156 {offsets = [0, 0], sizes = [8, 32], strides = [1, 1]} : vector<8x128xf32> to vector<8x32xf32>
    %158 = vector.extract_strided_slice %156 {offsets = [0, 32], sizes = [8, 32], strides = [1, 1]} : vector<8x128xf32> to vector<8x32xf32>
    %159 = arith.index_cast %107 : i32 to index
    %c0_74 = arith.constant 0 : index
    %160 = vector.load %arg3[%159, %c0_74] : memref<40x32xf32, #tpu.memory_space<vmem>>, vector<8x32xf32>
    %161 = arith.mulf %160, %158 : vector<8x32xf32>
    %cst_75 = arith.constant dense<0.000000e+00> : vector<32xf32>
    %162 = vector.multi_reduction <add>, %161, %cst_75 [0] : vector<8x32xf32> to vector<32xf32>
    %163 = vector.shape_cast %162 : vector<32xf32> to vector<1x32xf32>
    %164 = arith.index_cast %c1_i32_38 : i32 to index
    %c0_76 = arith.constant 0 : index
    %165 = vector.load %arg2[%164, %c0_76] : memref<5x16xf32, #tpu.memory_space<vmem>>, vector<1x16xf32>
    %cst_77 = arith.constant dense<0.000000e+00> : vector<1x128xf32>
    %166 = tpu.matmul %165, %2, %cst_77 {dimension_numbers = #tpu.dot_dimension_numbers<[1], [0], [0], [1], [0, 0, 1, 1], [], []>} : vector<1x16xf32>, vector<16x128xf32>, vector<1x128xf32> -> vector<1x128xf32>
    %167 = arith.addf %166, %4 : vector<1x128xf32>
    %168 = tpu.concatenate %163, %158 in 0 : vector<1x32xf32>, vector<8x32xf32> -> vector<9x32xf32>
    %cst_78 = arith.constant dense<0.000000e+00> : vector<9x128xf32>
    %169 = tpu.matmul %168, %3, %cst_78 {dimension_numbers = #tpu.dot_dimension_numbers<[1], [0], [0], [1], [0, 0, 1, 1], [], []>} : vector<9x32xf32>, vector<32x128xf32>, vector<9x128xf32> -> vector<9x128xf32>
    %170 = vector.extract_strided_slice %167 {offsets = [0, 0], sizes = [1, 96], strides = [1, 1]} : vector<1x128xf32> to vector<1x96xf32>
    %171 = vector.extract_strided_slice %169 {offsets = [0, 0], sizes = [1, 96], strides = [1, 1]} : vector<9x128xf32> to vector<1x96xf32>
    %172 = arith.addf %170, %171 : vector<1x96xf32>
    %173 = vector.extract_strided_slice %172 {offsets = [0, 0], sizes = [1, 32], strides = [1, 1]} : vector<1x96xf32> to vector<1x32xf32>
    %174 = arith.negf %173 : vector<1x32xf32>
    %175 = math.exp %174 : vector<1x32xf32>
    %cst_79 = arith.constant 1.000000e+00 : f32
    %176 = vector.broadcast %cst_79 : f32 to vector<1x32xf32>
    %177 = arith.addf %176, %175 : vector<1x32xf32>
    %178 = arith.divf %176, %177 : vector<1x32xf32>
    %179 = vector.extract_strided_slice %172 {offsets = [0, 32], sizes = [1, 32], strides = [1, 1]} : vector<1x96xf32> to vector<1x32xf32>
    %180 = arith.negf %179 : vector<1x32xf32>
    %181 = math.exp %180 : vector<1x32xf32>
    %cst_80 = arith.constant 1.000000e+00 : f32
    %182 = vector.broadcast %cst_80 : f32 to vector<1x32xf32>
    %183 = arith.addf %182, %181 : vector<1x32xf32>
    %184 = arith.divf %182, %183 : vector<1x32xf32>
    %185 = vector.extract_strided_slice %172 {offsets = [0, 64], sizes = [1, 32], strides = [1, 1]} : vector<1x96xf32> to vector<1x32xf32>
    %186 = math.tanh %185 : vector<1x32xf32>
    %187 = vector.extract_strided_slice %169 {offsets = [1, 96], sizes = [8, 32], strides = [1, 1]} : vector<9x128xf32> to vector<8x32xf32>
    %188 = vector.extract_strided_slice %167 {offsets = [0, 96], sizes = [1, 32], strides = [1, 1]} : vector<1x128xf32> to vector<1x32xf32>
    %189 = vector.broadcast %188 : vector<1x32xf32> to vector<8x32xf32>
    %190 = arith.addf %187, %189 : vector<8x32xf32>
    %191 = arith.negf %190 : vector<8x32xf32>
    %192 = math.exp %191 : vector<8x32xf32>
    %cst_81 = arith.constant 1.000000e+00 : f32
    %193 = vector.broadcast %cst_81 : f32 to vector<8x32xf32>
    %194 = arith.addf %193, %192 : vector<8x32xf32>
    %195 = arith.divf %193, %194 : vector<8x32xf32>
    %196 = arith.mulf %178, %186 : vector<1x32xf32>
    %197 = arith.mulf %195, %157 : vector<8x32xf32>
    %cst_82 = arith.constant dense<0.000000e+00> : vector<32xf32>
    %198 = vector.multi_reduction <add>, %197, %cst_82 [0] : vector<8x32xf32> to vector<32xf32>
    %199 = vector.shape_cast %198 : vector<32xf32> to vector<1x32xf32>
    %200 = arith.addf %196, %199 : vector<1x32xf32>
    %201 = math.tanh %200 : vector<1x32xf32>
    %202 = arith.mulf %184, %201 : vector<1x32xf32>
    %cst_83 = arith.constant 0.000000e+00 : f32
    %203 = vector.broadcast %cst_83 : f32 to vector<1x64xf32>
    %204 = tpu.concatenate %200, %202, %203 in 1 : vector<1x32xf32>, vector<1x32xf32>, vector<1x64xf32> -> vector<1x128xf32>
    %205 = arith.index_cast %c1_i32_38 : i32 to index
    %c0_84 = arith.constant 0 : index
    %206 = vector.load %arg7[%205, %c0_84] : memref<6x128xf32, #tpu.memory_space<vmem>>, vector<1x128xf32>
    tpu.vector_store %arg7[%205, %c0_84], %204 {strides = array<i32>} : memref<6x128xf32, #tpu.memory_space<vmem>>, vector<1x128xf32>,
    %c2_i32_85 = arith.constant 2 : i32
    %c8_i32_86 = arith.constant 8 : i32
    %207 = arith.muli %c2_i32_85, %c8_i32_86 : i32
    %208 = tpu.assume_multiple %207, 8 : i32
    %c0_i32_87 = arith.constant 0 : i32
    %209 = arith.addi %208, %c0_i32_87 : i32
    %210 = arith.index_cast %209 : i32 to index
    %211 = memref.load %arg1[%210] : memref<40xi32, #tpu.memory_space<smem>>
    %212 = arith.index_cast %211 : i32 to index
    %c0_88 = arith.constant 0 : index
    %213 = vector.load %arg7[%212, %c0_88] : memref<6x128xf32, #tpu.memory_space<vmem>>, vector<1x128xf32>
    %c0_89 = arith.constant 0 : index
    %c0_90 = arith.constant 0 : index
    %214 = vector.load %arg8[%c0_89, %c0_90] : memref<8x128xf32, #tpu.memory_space<vmem>>, vector<1x128xf32>
    tpu.vector_store %arg8[%c0_89, %c0_90], %213 {strides = array<i32>} : memref<8x128xf32, #tpu.memory_space<vmem>>, vector<1x128xf32>,
    %c1_i32_91 = arith.constant 1 : i32
    %215 = arith.addi %208, %c1_i32_91 : i32
    %216 = arith.index_cast %215 : i32 to index
    %217 = memref.load %arg1[%216] : memref<40xi32, #tpu.memory_space<smem>>
    %218 = arith.index_cast %217 : i32 to index
    %c0_92 = arith.constant 0 : index
    %219 = vector.load %arg7[%218, %c0_92] : memref<6x128xf32, #tpu.memory_space<vmem>>, vector<1x128xf32>
    %c1_93 = arith.constant 1 : index
    %c0_94 = arith.constant 0 : index
    %220 = vector.load %arg8[%c1_93, %c0_94] : memref<8x128xf32, #tpu.memory_space<vmem>>, vector<1x128xf32>
    tpu.vector_store %arg8[%c1_93, %c0_94], %219 {strides = array<i32>} : memref<8x128xf32, #tpu.memory_space<vmem>>, vector<1x128xf32>,
    %c2_i32_95 = arith.constant 2 : i32
    %221 = arith.addi %208, %c2_i32_95 : i32
    %222 = arith.index_cast %221 : i32 to index
    %223 = memref.load %arg1[%222] : memref<40xi32, #tpu.memory_space<smem>>
    %224 = arith.index_cast %223 : i32 to index
    %c0_96 = arith.constant 0 : index
    %225 = vector.load %arg7[%224, %c0_96] : memref<6x128xf32, #tpu.memory_space<vmem>>, vector<1x128xf32>
    %c2_97 = arith.constant 2 : index
    %c0_98 = arith.constant 0 : index
    %226 = vector.load %arg8[%c2_97, %c0_98] : memref<8x128xf32, #tpu.memory_space<vmem>>, vector<1x128xf32>
    tpu.vector_store %arg8[%c2_97, %c0_98], %225 {strides = array<i32>} : memref<8x128xf32, #tpu.memory_space<vmem>>, vector<1x128xf32>,
    %c3_i32_99 = arith.constant 3 : i32
    %227 = arith.addi %208, %c3_i32_99 : i32
    %228 = arith.index_cast %227 : i32 to index
    %229 = memref.load %arg1[%228] : memref<40xi32, #tpu.memory_space<smem>>
    %230 = arith.index_cast %229 : i32 to index
    %c0_100 = arith.constant 0 : index
    %231 = vector.load %arg7[%230, %c0_100] : memref<6x128xf32, #tpu.memory_space<vmem>>, vector<1x128xf32>
    %c3_101 = arith.constant 3 : index
    %c0_102 = arith.constant 0 : index
    %232 = vector.load %arg8[%c3_101, %c0_102] : memref<8x128xf32, #tpu.memory_space<vmem>>, vector<1x128xf32>
    tpu.vector_store %arg8[%c3_101, %c0_102], %231 {strides = array<i32>} : memref<8x128xf32, #tpu.memory_space<vmem>>, vector<1x128xf32>,
    %c4_i32_103 = arith.constant 4 : i32
    %233 = arith.addi %208, %c4_i32_103 : i32
    %234 = arith.index_cast %233 : i32 to index
    %235 = memref.load %arg1[%234] : memref<40xi32, #tpu.memory_space<smem>>
    %236 = arith.index_cast %235 : i32 to index
    %c0_104 = arith.constant 0 : index
    %237 = vector.load %arg7[%236, %c0_104] : memref<6x128xf32, #tpu.memory_space<vmem>>, vector<1x128xf32>
    %c4_105 = arith.constant 4 : index
    %c0_106 = arith.constant 0 : index
    %238 = vector.load %arg8[%c4_105, %c0_106] : memref<8x128xf32, #tpu.memory_space<vmem>>, vector<1x128xf32>
    tpu.vector_store %arg8[%c4_105, %c0_106], %237 {strides = array<i32>} : memref<8x128xf32, #tpu.memory_space<vmem>>, vector<1x128xf32>,
    %c5_i32_107 = arith.constant 5 : i32
    %239 = arith.addi %208, %c5_i32_107 : i32
    %240 = arith.index_cast %239 : i32 to index
    %241 = memref.load %arg1[%240] : memref<40xi32, #tpu.memory_space<smem>>
    %242 = arith.index_cast %241 : i32 to index
    %c0_108 = arith.constant 0 : index
    %243 = vector.load %arg7[%242, %c0_108] : memref<6x128xf32, #tpu.memory_space<vmem>>, vector<1x128xf32>
    %c5_109 = arith.constant 5 : index
    %c0_110 = arith.constant 0 : index
    %244 = vector.load %arg8[%c5_109, %c0_110] : memref<8x128xf32, #tpu.memory_space<vmem>>, vector<1x128xf32>
    tpu.vector_store %arg8[%c5_109, %c0_110], %243 {strides = array<i32>} : memref<8x128xf32, #tpu.memory_space<vmem>>, vector<1x128xf32>,
    %c6_i32_111 = arith.constant 6 : i32
    %245 = arith.addi %208, %c6_i32_111 : i32
    %246 = arith.index_cast %245 : i32 to index
    %247 = memref.load %arg1[%246] : memref<40xi32, #tpu.memory_space<smem>>
    %248 = arith.index_cast %247 : i32 to index
    %c0_112 = arith.constant 0 : index
    %249 = vector.load %arg7[%248, %c0_112] : memref<6x128xf32, #tpu.memory_space<vmem>>, vector<1x128xf32>
    %c6_113 = arith.constant 6 : index
    %c0_114 = arith.constant 0 : index
    %250 = vector.load %arg8[%c6_113, %c0_114] : memref<8x128xf32, #tpu.memory_space<vmem>>, vector<1x128xf32>
    tpu.vector_store %arg8[%c6_113, %c0_114], %249 {strides = array<i32>} : memref<8x128xf32, #tpu.memory_space<vmem>>, vector<1x128xf32>,
    %c7_i32_115 = arith.constant 7 : i32
    %251 = arith.addi %208, %c7_i32_115 : i32
    %252 = arith.index_cast %251 : i32 to index
    %253 = memref.load %arg1[%252] : memref<40xi32, #tpu.memory_space<smem>>
    %254 = arith.index_cast %253 : i32 to index
    %c0_116 = arith.constant 0 : index
    %255 = vector.load %arg7[%254, %c0_116] : memref<6x128xf32, #tpu.memory_space<vmem>>, vector<1x128xf32>
    %c7_117 = arith.constant 7 : index
    %c0_118 = arith.constant 0 : index
    %256 = vector.load %arg8[%c7_117, %c0_118] : memref<8x128xf32, #tpu.memory_space<vmem>>, vector<1x128xf32>
    tpu.vector_store %arg8[%c7_117, %c0_118], %255 {strides = array<i32>} : memref<8x128xf32, #tpu.memory_space<vmem>>, vector<1x128xf32>,
    %c0_119 = arith.constant 0 : index
    %c0_120 = arith.constant 0 : index
    %257 = vector.load %arg8[%c0_119, %c0_120] : memref<8x128xf32, #tpu.memory_space<vmem>>, vector<8x128xf32>
    %258 = vector.extract_strided_slice %257 {offsets = [0, 0], sizes = [8, 32], strides = [1, 1]} : vector<8x128xf32> to vector<8x32xf32>
    %259 = vector.extract_strided_slice %257 {offsets = [0, 32], sizes = [8, 32], strides = [1, 1]} : vector<8x128xf32> to vector<8x32xf32>
    %260 = arith.index_cast %208 : i32 to index
    %c0_121 = arith.constant 0 : index
    %261 = vector.load %arg3[%260, %c0_121] : memref<40x32xf32, #tpu.memory_space<vmem>>, vector<8x32xf32>
    %262 = arith.mulf %261, %259 : vector<8x32xf32>
    %cst_122 = arith.constant dense<0.000000e+00> : vector<32xf32>
    %263 = vector.multi_reduction <add>, %262, %cst_122 [0] : vector<8x32xf32> to vector<32xf32>
    %264 = vector.shape_cast %263 : vector<32xf32> to vector<1x32xf32>
    %265 = arith.index_cast %c2_i32_85 : i32 to index
    %c0_123 = arith.constant 0 : index
    %266 = vector.load %arg2[%265, %c0_123] : memref<5x16xf32, #tpu.memory_space<vmem>>, vector<1x16xf32>
    %cst_124 = arith.constant dense<0.000000e+00> : vector<1x128xf32>
    %267 = tpu.matmul %266, %2, %cst_124 {dimension_numbers = #tpu.dot_dimension_numbers<[1], [0], [0], [1], [0, 0, 1, 1], [], []>} : vector<1x16xf32>, vector<16x128xf32>, vector<1x128xf32> -> vector<1x128xf32>
    %268 = arith.addf %267, %4 : vector<1x128xf32>
    %269 = tpu.concatenate %264, %259 in 0 : vector<1x32xf32>, vector<8x32xf32> -> vector<9x32xf32>
    %cst_125 = arith.constant dense<0.000000e+00> : vector<9x128xf32>
    %270 = tpu.matmul %269, %3, %cst_125 {dimension_numbers = #tpu.dot_dimension_numbers<[1], [0], [0], [1], [0, 0, 1, 1], [], []>} : vector<9x32xf32>, vector<32x128xf32>, vector<9x128xf32> -> vector<9x128xf32>
    %271 = vector.extract_strided_slice %268 {offsets = [0, 0], sizes = [1, 96], strides = [1, 1]} : vector<1x128xf32> to vector<1x96xf32>
    %272 = vector.extract_strided_slice %270 {offsets = [0, 0], sizes = [1, 96], strides = [1, 1]} : vector<9x128xf32> to vector<1x96xf32>
    %273 = arith.addf %271, %272 : vector<1x96xf32>
    %274 = vector.extract_strided_slice %273 {offsets = [0, 0], sizes = [1, 32], strides = [1, 1]} : vector<1x96xf32> to vector<1x32xf32>
    %275 = arith.negf %274 : vector<1x32xf32>
    %276 = math.exp %275 : vector<1x32xf32>
    %cst_126 = arith.constant 1.000000e+00 : f32
    %277 = vector.broadcast %cst_126 : f32 to vector<1x32xf32>
    %278 = arith.addf %277, %276 : vector<1x32xf32>
    %279 = arith.divf %277, %278 : vector<1x32xf32>
    %280 = vector.extract_strided_slice %273 {offsets = [0, 32], sizes = [1, 32], strides = [1, 1]} : vector<1x96xf32> to vector<1x32xf32>
    %281 = arith.negf %280 : vector<1x32xf32>
    %282 = math.exp %281 : vector<1x32xf32>
    %cst_127 = arith.constant 1.000000e+00 : f32
    %283 = vector.broadcast %cst_127 : f32 to vector<1x32xf32>
    %284 = arith.addf %283, %282 : vector<1x32xf32>
    %285 = arith.divf %283, %284 : vector<1x32xf32>
    %286 = vector.extract_strided_slice %273 {offsets = [0, 64], sizes = [1, 32], strides = [1, 1]} : vector<1x96xf32> to vector<1x32xf32>
    %287 = math.tanh %286 : vector<1x32xf32>
    %288 = vector.extract_strided_slice %270 {offsets = [1, 96], sizes = [8, 32], strides = [1, 1]} : vector<9x128xf32> to vector<8x32xf32>
    %289 = vector.extract_strided_slice %268 {offsets = [0, 96], sizes = [1, 32], strides = [1, 1]} : vector<1x128xf32> to vector<1x32xf32>
    %290 = vector.broadcast %289 : vector<1x32xf32> to vector<8x32xf32>
    %291 = arith.addf %288, %290 : vector<8x32xf32>
    %292 = arith.negf %291 : vector<8x32xf32>
    %293 = math.exp %292 : vector<8x32xf32>
    %cst_128 = arith.constant 1.000000e+00 : f32
    %294 = vector.broadcast %cst_128 : f32 to vector<8x32xf32>
    %295 = arith.addf %294, %293 : vector<8x32xf32>
    %296 = arith.divf %294, %295 : vector<8x32xf32>
    %297 = arith.mulf %279, %287 : vector<1x32xf32>
    %298 = arith.mulf %296, %258 : vector<8x32xf32>
    %cst_129 = arith.constant dense<0.000000e+00> : vector<32xf32>
    %299 = vector.multi_reduction <add>, %298, %cst_129 [0] : vector<8x32xf32> to vector<32xf32>
    %300 = vector.shape_cast %299 : vector<32xf32> to vector<1x32xf32>
    %301 = arith.addf %297, %300 : vector<1x32xf32>
    %302 = math.tanh %301 : vector<1x32xf32>
    %303 = arith.mulf %285, %302 : vector<1x32xf32>
    %cst_130 = arith.constant 0.000000e+00 : f32
    %304 = vector.broadcast %cst_130 : f32 to vector<1x64xf32>
    %305 = tpu.concatenate %301, %303, %304 in 1 : vector<1x32xf32>, vector<1x32xf32>, vector<1x64xf32> -> vector<1x128xf32>
    %306 = arith.index_cast %c2_i32_85 : i32 to index
    %c0_131 = arith.constant 0 : index
    %307 = vector.load %arg7[%306, %c0_131] : memref<6x128xf32, #tpu.memory_space<vmem>>, vector<1x128xf32>
    tpu.vector_store %arg7[%306, %c0_131], %305 {strides = array<i32>} : memref<6x128xf32, #tpu.memory_space<vmem>>, vector<1x128xf32>,
    %c3_i32_132 = arith.constant 3 : i32
    %c8_i32_133 = arith.constant 8 : i32
    %308 = arith.muli %c3_i32_132, %c8_i32_133 : i32
    %309 = tpu.assume_multiple %308, 8 : i32
    %c0_i32_134 = arith.constant 0 : i32
    %310 = arith.addi %309, %c0_i32_134 : i32
    %311 = arith.index_cast %310 : i32 to index
    %312 = memref.load %arg1[%311] : memref<40xi32, #tpu.memory_space<smem>>
    %313 = arith.index_cast %312 : i32 to index
    %c0_135 = arith.constant 0 : index
    %314 = vector.load %arg7[%313, %c0_135] : memref<6x128xf32, #tpu.memory_space<vmem>>, vector<1x128xf32>
    %c0_136 = arith.constant 0 : index
    %c0_137 = arith.constant 0 : index
    %315 = vector.load %arg8[%c0_136, %c0_137] : memref<8x128xf32, #tpu.memory_space<vmem>>, vector<1x128xf32>
    tpu.vector_store %arg8[%c0_136, %c0_137], %314 {strides = array<i32>} : memref<8x128xf32, #tpu.memory_space<vmem>>, vector<1x128xf32>,
    %c1_i32_138 = arith.constant 1 : i32
    %316 = arith.addi %309, %c1_i32_138 : i32
    %317 = arith.index_cast %316 : i32 to index
    %318 = memref.load %arg1[%317] : memref<40xi32, #tpu.memory_space<smem>>
    %319 = arith.index_cast %318 : i32 to index
    %c0_139 = arith.constant 0 : index
    %320 = vector.load %arg7[%319, %c0_139] : memref<6x128xf32, #tpu.memory_space<vmem>>, vector<1x128xf32>
    %c1_140 = arith.constant 1 : index
    %c0_141 = arith.constant 0 : index
    %321 = vector.load %arg8[%c1_140, %c0_141] : memref<8x128xf32, #tpu.memory_space<vmem>>, vector<1x128xf32>
    tpu.vector_store %arg8[%c1_140, %c0_141], %320 {strides = array<i32>} : memref<8x128xf32, #tpu.memory_space<vmem>>, vector<1x128xf32>,
    %c2_i32_142 = arith.constant 2 : i32
    %322 = arith.addi %309, %c2_i32_142 : i32
    %323 = arith.index_cast %322 : i32 to index
    %324 = memref.load %arg1[%323] : memref<40xi32, #tpu.memory_space<smem>>
    %325 = arith.index_cast %324 : i32 to index
    %c0_143 = arith.constant 0 : index
    %326 = vector.load %arg7[%325, %c0_143] : memref<6x128xf32, #tpu.memory_space<vmem>>, vector<1x128xf32>
    %c2_144 = arith.constant 2 : index
    %c0_145 = arith.constant 0 : index
    %327 = vector.load %arg8[%c2_144, %c0_145] : memref<8x128xf32, #tpu.memory_space<vmem>>, vector<1x128xf32>
    tpu.vector_store %arg8[%c2_144, %c0_145], %326 {strides = array<i32>} : memref<8x128xf32, #tpu.memory_space<vmem>>, vector<1x128xf32>,
    %c3_i32_146 = arith.constant 3 : i32
    %328 = arith.addi %309, %c3_i32_146 : i32
    %329 = arith.index_cast %328 : i32 to index
    %330 = memref.load %arg1[%329] : memref<40xi32, #tpu.memory_space<smem>>
    %331 = arith.index_cast %330 : i32 to index
    %c0_147 = arith.constant 0 : index
    %332 = vector.load %arg7[%331, %c0_147] : memref<6x128xf32, #tpu.memory_space<vmem>>, vector<1x128xf32>
    %c3_148 = arith.constant 3 : index
    %c0_149 = arith.constant 0 : index
    %333 = vector.load %arg8[%c3_148, %c0_149] : memref<8x128xf32, #tpu.memory_space<vmem>>, vector<1x128xf32>
    tpu.vector_store %arg8[%c3_148, %c0_149], %332 {strides = array<i32>} : memref<8x128xf32, #tpu.memory_space<vmem>>, vector<1x128xf32>,
    %c4_i32_150 = arith.constant 4 : i32
    %334 = arith.addi %309, %c4_i32_150 : i32
    %335 = arith.index_cast %334 : i32 to index
    %336 = memref.load %arg1[%335] : memref<40xi32, #tpu.memory_space<smem>>
    %337 = arith.index_cast %336 : i32 to index
    %c0_151 = arith.constant 0 : index
    %338 = vector.load %arg7[%337, %c0_151] : memref<6x128xf32, #tpu.memory_space<vmem>>, vector<1x128xf32>
    %c4_152 = arith.constant 4 : index
    %c0_153 = arith.constant 0 : index
    %339 = vector.load %arg8[%c4_152, %c0_153] : memref<8x128xf32, #tpu.memory_space<vmem>>, vector<1x128xf32>
    tpu.vector_store %arg8[%c4_152, %c0_153], %338 {strides = array<i32>} : memref<8x128xf32, #tpu.memory_space<vmem>>, vector<1x128xf32>,
    %c5_i32_154 = arith.constant 5 : i32
    %340 = arith.addi %309, %c5_i32_154 : i32
    %341 = arith.index_cast %340 : i32 to index
    %342 = memref.load %arg1[%341] : memref<40xi32, #tpu.memory_space<smem>>
    %343 = arith.index_cast %342 : i32 to index
    %c0_155 = arith.constant 0 : index
    %344 = vector.load %arg7[%343, %c0_155] : memref<6x128xf32, #tpu.memory_space<vmem>>, vector<1x128xf32>
    %c5_156 = arith.constant 5 : index
    %c0_157 = arith.constant 0 : index
    %345 = vector.load %arg8[%c5_156, %c0_157] : memref<8x128xf32, #tpu.memory_space<vmem>>, vector<1x128xf32>
    tpu.vector_store %arg8[%c5_156, %c0_157], %344 {strides = array<i32>} : memref<8x128xf32, #tpu.memory_space<vmem>>, vector<1x128xf32>,
    %c6_i32_158 = arith.constant 6 : i32
    %346 = arith.addi %309, %c6_i32_158 : i32
    %347 = arith.index_cast %346 : i32 to index
    %348 = memref.load %arg1[%347] : memref<40xi32, #tpu.memory_space<smem>>
    %349 = arith.index_cast %348 : i32 to index
    %c0_159 = arith.constant 0 : index
    %350 = vector.load %arg7[%349, %c0_159] : memref<6x128xf32, #tpu.memory_space<vmem>>, vector<1x128xf32>
    %c6_160 = arith.constant 6 : index
    %c0_161 = arith.constant 0 : index
    %351 = vector.load %arg8[%c6_160, %c0_161] : memref<8x128xf32, #tpu.memory_space<vmem>>, vector<1x128xf32>
    tpu.vector_store %arg8[%c6_160, %c0_161], %350 {strides = array<i32>} : memref<8x128xf32, #tpu.memory_space<vmem>>, vector<1x128xf32>,
    %c7_i32_162 = arith.constant 7 : i32
    %352 = arith.addi %309, %c7_i32_162 : i32
    %353 = arith.index_cast %352 : i32 to index
    %354 = memref.load %arg1[%353] : memref<40xi32, #tpu.memory_space<smem>>
    %355 = arith.index_cast %354 : i32 to index
    %c0_163 = arith.constant 0 : index
    %356 = vector.load %arg7[%355, %c0_163] : memref<6x128xf32, #tpu.memory_space<vmem>>, vector<1x128xf32>
    %c7_164 = arith.constant 7 : index
    %c0_165 = arith.constant 0 : index
    %357 = vector.load %arg8[%c7_164, %c0_165] : memref<8x128xf32, #tpu.memory_space<vmem>>, vector<1x128xf32>
    tpu.vector_store %arg8[%c7_164, %c0_165], %356 {strides = array<i32>} : memref<8x128xf32, #tpu.memory_space<vmem>>, vector<1x128xf32>,
    %c0_166 = arith.constant 0 : index
    %c0_167 = arith.constant 0 : index
    %358 = vector.load %arg8[%c0_166, %c0_167] : memref<8x128xf32, #tpu.memory_space<vmem>>, vector<8x128xf32>
    %359 = vector.extract_strided_slice %358 {offsets = [0, 0], sizes = [8, 32], strides = [1, 1]} : vector<8x128xf32> to vector<8x32xf32>
    %360 = vector.extract_strided_slice %358 {offsets = [0, 32], sizes = [8, 32], strides = [1, 1]} : vector<8x128xf32> to vector<8x32xf32>
    %361 = arith.index_cast %309 : i32 to index
    %c0_168 = arith.constant 0 : index
    %362 = vector.load %arg3[%361, %c0_168] : memref<40x32xf32, #tpu.memory_space<vmem>>, vector<8x32xf32>
    %363 = arith.mulf %362, %360 : vector<8x32xf32>
    %cst_169 = arith.constant dense<0.000000e+00> : vector<32xf32>
    %364 = vector.multi_reduction <add>, %363, %cst_169 [0] : vector<8x32xf32> to vector<32xf32>
    %365 = vector.shape_cast %364 : vector<32xf32> to vector<1x32xf32>
    %366 = arith.index_cast %c3_i32_132 : i32 to index
    %c0_170 = arith.constant 0 : index
    %367 = vector.load %arg2[%366, %c0_170] : memref<5x16xf32, #tpu.memory_space<vmem>>, vector<1x16xf32>
    %cst_171 = arith.constant dense<0.000000e+00> : vector<1x128xf32>
    %368 = tpu.matmul %367, %2, %cst_171 {dimension_numbers = #tpu.dot_dimension_numbers<[1], [0], [0], [1], [0, 0, 1, 1], [], []>} : vector<1x16xf32>, vector<16x128xf32>, vector<1x128xf32> -> vector<1x128xf32>
    %369 = arith.addf %368, %4 : vector<1x128xf32>
    %370 = tpu.concatenate %365, %360 in 0 : vector<1x32xf32>, vector<8x32xf32> -> vector<9x32xf32>
    %cst_172 = arith.constant dense<0.000000e+00> : vector<9x128xf32>
    %371 = tpu.matmul %370, %3, %cst_172 {dimension_numbers = #tpu.dot_dimension_numbers<[1], [0], [0], [1], [0, 0, 1, 1], [], []>} : vector<9x32xf32>, vector<32x128xf32>, vector<9x128xf32> -> vector<9x128xf32>
    %372 = vector.extract_strided_slice %369 {offsets = [0, 0], sizes = [1, 96], strides = [1, 1]} : vector<1x128xf32> to vector<1x96xf32>
    %373 = vector.extract_strided_slice %371 {offsets = [0, 0], sizes = [1, 96], strides = [1, 1]} : vector<9x128xf32> to vector<1x96xf32>
    %374 = arith.addf %372, %373 : vector<1x96xf32>
    %375 = vector.extract_strided_slice %374 {offsets = [0, 0], sizes = [1, 32], strides = [1, 1]} : vector<1x96xf32> to vector<1x32xf32>
    %376 = arith.negf %375 : vector<1x32xf32>
    %377 = math.exp %376 : vector<1x32xf32>
    %cst_173 = arith.constant 1.000000e+00 : f32
    %378 = vector.broadcast %cst_173 : f32 to vector<1x32xf32>
    %379 = arith.addf %378, %377 : vector<1x32xf32>
    %380 = arith.divf %378, %379 : vector<1x32xf32>
    %381 = vector.extract_strided_slice %374 {offsets = [0, 32], sizes = [1, 32], strides = [1, 1]} : vector<1x96xf32> to vector<1x32xf32>
    %382 = arith.negf %381 : vector<1x32xf32>
    %383 = math.exp %382 : vector<1x32xf32>
    %cst_174 = arith.constant 1.000000e+00 : f32
    %384 = vector.broadcast %cst_174 : f32 to vector<1x32xf32>
    %385 = arith.addf %384, %383 : vector<1x32xf32>
    %386 = arith.divf %384, %385 : vector<1x32xf32>
    %387 = vector.extract_strided_slice %374 {offsets = [0, 64], sizes = [1, 32], strides = [1, 1]} : vector<1x96xf32> to vector<1x32xf32>
    %388 = math.tanh %387 : vector<1x32xf32>
    %389 = vector.extract_strided_slice %371 {offsets = [1, 96], sizes = [8, 32], strides = [1, 1]} : vector<9x128xf32> to vector<8x32xf32>
    %390 = vector.extract_strided_slice %369 {offsets = [0, 96], sizes = [1, 32], strides = [1, 1]} : vector<1x128xf32> to vector<1x32xf32>
    %391 = vector.broadcast %390 : vector<1x32xf32> to vector<8x32xf32>
    %392 = arith.addf %389, %391 : vector<8x32xf32>
    %393 = arith.negf %392 : vector<8x32xf32>
    %394 = math.exp %393 : vector<8x32xf32>
    %cst_175 = arith.constant 1.000000e+00 : f32
    %395 = vector.broadcast %cst_175 : f32 to vector<8x32xf32>
    %396 = arith.addf %395, %394 : vector<8x32xf32>
    %397 = arith.divf %395, %396 : vector<8x32xf32>
    %398 = arith.mulf %380, %388 : vector<1x32xf32>
    %399 = arith.mulf %397, %359 : vector<8x32xf32>
    %cst_176 = arith.constant dense<0.000000e+00> : vector<32xf32>
    %400 = vector.multi_reduction <add>, %399, %cst_176 [0] : vector<8x32xf32> to vector<32xf32>
    %401 = vector.shape_cast %400 : vector<32xf32> to vector<1x32xf32>
    %402 = arith.addf %398, %401 : vector<1x32xf32>
    %403 = math.tanh %402 : vector<1x32xf32>
    %404 = arith.mulf %386, %403 : vector<1x32xf32>
    %cst_177 = arith.constant 0.000000e+00 : f32
    %405 = vector.broadcast %cst_177 : f32 to vector<1x64xf32>
    %406 = tpu.concatenate %402, %404, %405 in 1 : vector<1x32xf32>, vector<1x32xf32>, vector<1x64xf32> -> vector<1x128xf32>
    %407 = arith.index_cast %c3_i32_132 : i32 to index
    %c0_178 = arith.constant 0 : index
    %408 = vector.load %arg7[%407, %c0_178] : memref<6x128xf32, #tpu.memory_space<vmem>>, vector<1x128xf32>
    tpu.vector_store %arg7[%407, %c0_178], %406 {strides = array<i32>} : memref<6x128xf32, #tpu.memory_space<vmem>>, vector<1x128xf32>,
    %c4_i32_179 = arith.constant 4 : i32
    %c8_i32_180 = arith.constant 8 : i32
    %409 = arith.muli %c4_i32_179, %c8_i32_180 : i32
    %410 = tpu.assume_multiple %409, 8 : i32
    %c0_i32_181 = arith.constant 0 : i32
    %411 = arith.addi %410, %c0_i32_181 : i32
    %412 = arith.index_cast %411 : i32 to index
    %413 = memref.load %arg1[%412] : memref<40xi32, #tpu.memory_space<smem>>
    %414 = arith.index_cast %413 : i32 to index
    %c0_182 = arith.constant 0 : index
    %415 = vector.load %arg7[%414, %c0_182] : memref<6x128xf32, #tpu.memory_space<vmem>>, vector<1x128xf32>
    %c0_183 = arith.constant 0 : index
    %c0_184 = arith.constant 0 : index
    %416 = vector.load %arg8[%c0_183, %c0_184] : memref<8x128xf32, #tpu.memory_space<vmem>>, vector<1x128xf32>
    tpu.vector_store %arg8[%c0_183, %c0_184], %415 {strides = array<i32>} : memref<8x128xf32, #tpu.memory_space<vmem>>, vector<1x128xf32>,
    %c1_i32_185 = arith.constant 1 : i32
    %417 = arith.addi %410, %c1_i32_185 : i32
    %418 = arith.index_cast %417 : i32 to index
    %419 = memref.load %arg1[%418] : memref<40xi32, #tpu.memory_space<smem>>
    %420 = arith.index_cast %419 : i32 to index
    %c0_186 = arith.constant 0 : index
    %421 = vector.load %arg7[%420, %c0_186] : memref<6x128xf32, #tpu.memory_space<vmem>>, vector<1x128xf32>
    %c1_187 = arith.constant 1 : index
    %c0_188 = arith.constant 0 : index
    %422 = vector.load %arg8[%c1_187, %c0_188] : memref<8x128xf32, #tpu.memory_space<vmem>>, vector<1x128xf32>
    tpu.vector_store %arg8[%c1_187, %c0_188], %421 {strides = array<i32>} : memref<8x128xf32, #tpu.memory_space<vmem>>, vector<1x128xf32>,
    %c2_i32_189 = arith.constant 2 : i32
    %423 = arith.addi %410, %c2_i32_189 : i32
    %424 = arith.index_cast %423 : i32 to index
    %425 = memref.load %arg1[%424] : memref<40xi32, #tpu.memory_space<smem>>
    %426 = arith.index_cast %425 : i32 to index
    %c0_190 = arith.constant 0 : index
    %427 = vector.load %arg7[%426, %c0_190] : memref<6x128xf32, #tpu.memory_space<vmem>>, vector<1x128xf32>
    %c2_191 = arith.constant 2 : index
    %c0_192 = arith.constant 0 : index
    %428 = vector.load %arg8[%c2_191, %c0_192] : memref<8x128xf32, #tpu.memory_space<vmem>>, vector<1x128xf32>
    tpu.vector_store %arg8[%c2_191, %c0_192], %427 {strides = array<i32>} : memref<8x128xf32, #tpu.memory_space<vmem>>, vector<1x128xf32>,
    %c3_i32_193 = arith.constant 3 : i32
    %429 = arith.addi %410, %c3_i32_193 : i32
    %430 = arith.index_cast %429 : i32 to index
    %431 = memref.load %arg1[%430] : memref<40xi32, #tpu.memory_space<smem>>
    %432 = arith.index_cast %431 : i32 to index
    %c0_194 = arith.constant 0 : index
    %433 = vector.load %arg7[%432, %c0_194] : memref<6x128xf32, #tpu.memory_space<vmem>>, vector<1x128xf32>
    %c3_195 = arith.constant 3 : index
    %c0_196 = arith.constant 0 : index
    %434 = vector.load %arg8[%c3_195, %c0_196] : memref<8x128xf32, #tpu.memory_space<vmem>>, vector<1x128xf32>
    tpu.vector_store %arg8[%c3_195, %c0_196], %433 {strides = array<i32>} : memref<8x128xf32, #tpu.memory_space<vmem>>, vector<1x128xf32>,
    %c4_i32_197 = arith.constant 4 : i32
    %435 = arith.addi %410, %c4_i32_197 : i32
    %436 = arith.index_cast %435 : i32 to index
    %437 = memref.load %arg1[%436] : memref<40xi32, #tpu.memory_space<smem>>
    %438 = arith.index_cast %437 : i32 to index
    %c0_198 = arith.constant 0 : index
    %439 = vector.load %arg7[%438, %c0_198] : memref<6x128xf32, #tpu.memory_space<vmem>>, vector<1x128xf32>
    %c4_199 = arith.constant 4 : index
    %c0_200 = arith.constant 0 : index
    %440 = vector.load %arg8[%c4_199, %c0_200] : memref<8x128xf32, #tpu.memory_space<vmem>>, vector<1x128xf32>
    tpu.vector_store %arg8[%c4_199, %c0_200], %439 {strides = array<i32>} : memref<8x128xf32, #tpu.memory_space<vmem>>, vector<1x128xf32>,
    %c5_i32_201 = arith.constant 5 : i32
    %441 = arith.addi %410, %c5_i32_201 : i32
    %442 = arith.index_cast %441 : i32 to index
    %443 = memref.load %arg1[%442] : memref<40xi32, #tpu.memory_space<smem>>
    %444 = arith.index_cast %443 : i32 to index
    %c0_202 = arith.constant 0 : index
    %445 = vector.load %arg7[%444, %c0_202] : memref<6x128xf32, #tpu.memory_space<vmem>>, vector<1x128xf32>
    %c5_203 = arith.constant 5 : index
    %c0_204 = arith.constant 0 : index
    %446 = vector.load %arg8[%c5_203, %c0_204] : memref<8x128xf32, #tpu.memory_space<vmem>>, vector<1x128xf32>
    tpu.vector_store %arg8[%c5_203, %c0_204], %445 {strides = array<i32>} : memref<8x128xf32, #tpu.memory_space<vmem>>, vector<1x128xf32>,
    %c6_i32_205 = arith.constant 6 : i32
    %447 = arith.addi %410, %c6_i32_205 : i32
    %448 = arith.index_cast %447 : i32 to index
    %449 = memref.load %arg1[%448] : memref<40xi32, #tpu.memory_space<smem>>
    %450 = arith.index_cast %449 : i32 to index
    %c0_206 = arith.constant 0 : index
    %451 = vector.load %arg7[%450, %c0_206] : memref<6x128xf32, #tpu.memory_space<vmem>>, vector<1x128xf32>
    %c6_207 = arith.constant 6 : index
    %c0_208 = arith.constant 0 : index
    %452 = vector.load %arg8[%c6_207, %c0_208] : memref<8x128xf32, #tpu.memory_space<vmem>>, vector<1x128xf32>
    tpu.vector_store %arg8[%c6_207, %c0_208], %451 {strides = array<i32>} : memref<8x128xf32, #tpu.memory_space<vmem>>, vector<1x128xf32>,
    %c7_i32_209 = arith.constant 7 : i32
    %453 = arith.addi %410, %c7_i32_209 : i32
    %454 = arith.index_cast %453 : i32 to index
    %455 = memref.load %arg1[%454] : memref<40xi32, #tpu.memory_space<smem>>
    %456 = arith.index_cast %455 : i32 to index
    %c0_210 = arith.constant 0 : index
    %457 = vector.load %arg7[%456, %c0_210] : memref<6x128xf32, #tpu.memory_space<vmem>>, vector<1x128xf32>
    %c7_211 = arith.constant 7 : index
    %c0_212 = arith.constant 0 : index
    %458 = vector.load %arg8[%c7_211, %c0_212] : memref<8x128xf32, #tpu.memory_space<vmem>>, vector<1x128xf32>
    tpu.vector_store %arg8[%c7_211, %c0_212], %457 {strides = array<i32>} : memref<8x128xf32, #tpu.memory_space<vmem>>, vector<1x128xf32>,
    %c0_213 = arith.constant 0 : index
    %c0_214 = arith.constant 0 : index
    %459 = vector.load %arg8[%c0_213, %c0_214] : memref<8x128xf32, #tpu.memory_space<vmem>>, vector<8x128xf32>
    %460 = vector.extract_strided_slice %459 {offsets = [0, 0], sizes = [8, 32], strides = [1, 1]} : vector<8x128xf32> to vector<8x32xf32>
    %461 = vector.extract_strided_slice %459 {offsets = [0, 32], sizes = [8, 32], strides = [1, 1]} : vector<8x128xf32> to vector<8x32xf32>
    %462 = arith.index_cast %410 : i32 to index
    %c0_215 = arith.constant 0 : index
    %463 = vector.load %arg3[%462, %c0_215] : memref<40x32xf32, #tpu.memory_space<vmem>>, vector<8x32xf32>
    %464 = arith.mulf %463, %461 : vector<8x32xf32>
    %cst_216 = arith.constant dense<0.000000e+00> : vector<32xf32>
    %465 = vector.multi_reduction <add>, %464, %cst_216 [0] : vector<8x32xf32> to vector<32xf32>
    %466 = vector.shape_cast %465 : vector<32xf32> to vector<1x32xf32>
    %467 = arith.index_cast %c4_i32_179 : i32 to index
    %c0_217 = arith.constant 0 : index
    %468 = vector.load %arg2[%467, %c0_217] : memref<5x16xf32, #tpu.memory_space<vmem>>, vector<1x16xf32>
    %cst_218 = arith.constant dense<0.000000e+00> : vector<1x128xf32>
    %469 = tpu.matmul %468, %2, %cst_218 {dimension_numbers = #tpu.dot_dimension_numbers<[1], [0], [0], [1], [0, 0, 1, 1], [], []>} : vector<1x16xf32>, vector<16x128xf32>, vector<1x128xf32> -> vector<1x128xf32>
    %470 = arith.addf %469, %4 : vector<1x128xf32>
    %471 = tpu.concatenate %466, %461 in 0 : vector<1x32xf32>, vector<8x32xf32> -> vector<9x32xf32>
    %cst_219 = arith.constant dense<0.000000e+00> : vector<9x128xf32>
    %472 = tpu.matmul %471, %3, %cst_219 {dimension_numbers = #tpu.dot_dimension_numbers<[1], [0], [0], [1], [0, 0, 1, 1], [], []>} : vector<9x32xf32>, vector<32x128xf32>, vector<9x128xf32> -> vector<9x128xf32>
    %473 = vector.extract_strided_slice %470 {offsets = [0, 0], sizes = [1, 96], strides = [1, 1]} : vector<1x128xf32> to vector<1x96xf32>
    %474 = vector.extract_strided_slice %472 {offsets = [0, 0], sizes = [1, 96], strides = [1, 1]} : vector<9x128xf32> to vector<1x96xf32>
    %475 = arith.addf %473, %474 : vector<1x96xf32>
    %476 = vector.extract_strided_slice %475 {offsets = [0, 0], sizes = [1, 32], strides = [1, 1]} : vector<1x96xf32> to vector<1x32xf32>
    %477 = arith.negf %476 : vector<1x32xf32>
    %478 = math.exp %477 : vector<1x32xf32>
    %cst_220 = arith.constant 1.000000e+00 : f32
    %479 = vector.broadcast %cst_220 : f32 to vector<1x32xf32>
    %480 = arith.addf %479, %478 : vector<1x32xf32>
    %481 = arith.divf %479, %480 : vector<1x32xf32>
    %482 = vector.extract_strided_slice %475 {offsets = [0, 32], sizes = [1, 32], strides = [1, 1]} : vector<1x96xf32> to vector<1x32xf32>
    %483 = arith.negf %482 : vector<1x32xf32>
    %484 = math.exp %483 : vector<1x32xf32>
    %cst_221 = arith.constant 1.000000e+00 : f32
    %485 = vector.broadcast %cst_221 : f32 to vector<1x32xf32>
    %486 = arith.addf %485, %484 : vector<1x32xf32>
    %487 = arith.divf %485, %486 : vector<1x32xf32>
    %488 = vector.extract_strided_slice %475 {offsets = [0, 64], sizes = [1, 32], strides = [1, 1]} : vector<1x96xf32> to vector<1x32xf32>
    %489 = math.tanh %488 : vector<1x32xf32>
    %490 = vector.extract_strided_slice %472 {offsets = [1, 96], sizes = [8, 32], strides = [1, 1]} : vector<9x128xf32> to vector<8x32xf32>
    %491 = vector.extract_strided_slice %470 {offsets = [0, 96], sizes = [1, 32], strides = [1, 1]} : vector<1x128xf32> to vector<1x32xf32>
    %492 = vector.broadcast %491 : vector<1x32xf32> to vector<8x32xf32>
    %493 = arith.addf %490, %492 : vector<8x32xf32>
    %494 = arith.negf %493 : vector<8x32xf32>
    %495 = math.exp %494 : vector<8x32xf32>
    %cst_222 = arith.constant 1.000000e+00 : f32
    %496 = vector.broadcast %cst_222 : f32 to vector<8x32xf32>
    %497 = arith.addf %496, %495 : vector<8x32xf32>
    %498 = arith.divf %496, %497 : vector<8x32xf32>
    %499 = arith.mulf %481, %489 : vector<1x32xf32>
    %500 = arith.mulf %498, %460 : vector<8x32xf32>
    %cst_223 = arith.constant dense<0.000000e+00> : vector<32xf32>
    %501 = vector.multi_reduction <add>, %500, %cst_223 [0] : vector<8x32xf32> to vector<32xf32>
    %502 = vector.shape_cast %501 : vector<32xf32> to vector<1x32xf32>
    %503 = arith.addf %499, %502 : vector<1x32xf32>
    %504 = math.tanh %503 : vector<1x32xf32>
    %505 = arith.mulf %487, %504 : vector<1x32xf32>
    %cst_224 = arith.constant 0.000000e+00 : f32
    %506 = vector.broadcast %cst_224 : f32 to vector<1x64xf32>
    %507 = tpu.concatenate %503, %505, %506 in 1 : vector<1x32xf32>, vector<1x32xf32>, vector<1x64xf32> -> vector<1x128xf32>
    %508 = arith.index_cast %c4_i32_179 : i32 to index
    %c0_225 = arith.constant 0 : index
    %509 = vector.load %arg7[%508, %c0_225] : memref<6x128xf32, #tpu.memory_space<vmem>>, vector<1x128xf32>
    tpu.vector_store %arg7[%508, %c0_225], %507 {strides = array<i32>} : memref<6x128xf32, #tpu.memory_space<vmem>>, vector<1x128xf32>,
    %c5_i32_226 = arith.constant 5 : i32
    return
  }
  func.func @transform_0(%arg0: i32, %arg1: memref<40xi32, #tpu.memory_space<smem>>) -> (i32, i32) {
    %c0_i32 = arith.constant 0 : i32
    %c0_i32_0 = arith.constant 0 : i32
    %c0_i32_1 = arith.constant 0 : i32
    return %c0_i32, %c0_i32_0 : i32, i32
  }
  func.func @transform_1(%arg0: i32, %arg1: memref<40xi32, #tpu.memory_space<smem>>) -> (i32, i32) {
    %c0_i32 = arith.constant 0 : i32
    %c0_i32_0 = arith.constant 0 : i32
    %c0_i32_1 = arith.constant 0 : i32
    return %c0_i32, %c0_i32_0 : i32, i32
  }
  func.func @transform_2(%arg0: i32, %arg1: memref<40xi32, #tpu.memory_space<smem>>) -> (i32, i32) {
    %c0_i32 = arith.constant 0 : i32
    %c0_i32_0 = arith.constant 0 : i32
    %c0_i32_1 = arith.constant 0 : i32
    return %c0_i32, %c0_i32_0 : i32, i32
  }
  func.func @transform_3(%arg0: i32, %arg1: memref<40xi32, #tpu.memory_space<smem>>) -> (i32, i32) {
    %c0_i32 = arith.constant 0 : i32
    %c0_i32_0 = arith.constant 0 : i32
    %c0_i32_1 = arith.constant 0 : i32
    return %c0_i32, %c0_i32_0 : i32, i32
  }
  func.func @transform_4(%arg0: i32, %arg1: memref<40xi32, #tpu.memory_space<smem>>) -> (i32, i32) {
    %c0_i32 = arith.constant 0 : i32
    %c0_i32_0 = arith.constant 0 : i32
    %c0_i32_1 = arith.constant 0 : i32
    return %c0_i32, %c0_i32_0 : i32, i32
  }
  func.func @transform_5(%arg0: i32, %arg1: memref<40xi32, #tpu.memory_space<smem>>) -> (i32, i32) {
    %c0_i32 = arith.constant 0 : i32
    %c0_i32_0 = arith.constant 0 : i32
    %c0_i32_1 = arith.constant 0 : i32
    return %c0_i32, %c0_i32_0 : i32, i32
  }
}

</mosaic_0001>

<bundles_post_ra>
// kernel: fn.1
= control target key start
LH: loop header
LB: loop body
LE: loop exit
PB: predicated region body
PF: predicated region fallthrough
CT: control target
= control target key end

     0   :  { %s2057_s0 = inlined_call_operand.vmem [shape: s32[40], index: 0, kind: input, shape index: {}]   ;;  %s2058_s1 = inlined_call_operand.vmem [shape: f32[5,16], index: 1, kind: input, shape index: {}]   ;;  %s2059_s2 = inlined_call_operand.vmem [shape: f32[40,32], index: 2, kind: input, shape index: {}]   ;;  %s2060_s3 = inlined_call_operand.vmem [shape: f32[16,128], index: 3, kind: input, shape index: {}]   ;;  %s2061_s4 = inlined_call_operand.vmem [shape: f32[32,128], index: 4, kind: input, shape index: {}]   ;;  %s2062_s5 = inlined_call_operand.vmem [shape: f32[1,128], index: 5, kind: input, shape index: {}]   ;;  %s2063_s6 = inlined_call_operand.hbm [shape: f32[6,128], index: 6, kind: output, shape index: {}]  }
   0x1   :  { %s11_s23 = sshll.u32 %s2057_s0, 4  ;;  %s12_s23 = int_to_ptr.vmem [resolvable:$true] %s11_s23 }
   0x2   :  { %s1755_s24 = scalar_lea.vmem %s12_s23, 16  ;;  %p1760_p1 = scmp.lt.s32.totalorder %s12_s23, %s12_s23 }
   0x3   :  { %p1756_p0 = scmp.ne.s32.totalorder %s12_s23, %s1755_s24  ;;  %p1761_p2 = scmp.lt.s32.totalorder %s1755_s24, %s1755_s24 }
   0x5   :  { %p1762_p3 = por %p1761_p2, %p1760_p1 }
   0x7   :  { %p1763_p4 = pnand %p1762_p3, %p1756_p0 }
   0x9   :  { %1766 = shalt.err (!%p1763_p4)  }
   0xa   :  { %s1791_s25 = smov [#allocation4]  }
   0xb   :  { %14 = dma.vmem_to_smem %s12_s23, 16, %s1791_s25, [#allocation3] }
   0xc   :  { %1787 = dma.done.wait [#allocation3], 16 }
   0xd   :  { %1788 = vsyncadd [#allocation3], 4294967280 }
   0xe   :  { %16 = sfence }
   0xf   :  { %s36_s26 = sld [smem:[#allocation4]]  ;;  %v1792_v0 = vmov 0.0  }
  0x10   :  { %28 = vst [vmem:[#allocation5] sm:$0x3f] %v1792_v0  ;;  %s1460_s27 = sld [smem:[#allocation4 + $0x1]]  ;;  %1578 = vmatprep.subr.mxu0 %v1792_v0 }
  0x11   :  { %17 = vsyncpa [#allocation6], 0  ;;  %s1461_s0 = sld [smem:[#allocation4 + $0x2]]  ;;  %v1841_v9 = vld [vmem:[%s2061_s4 + $0x18] sm:$0xff]  ;;  %v1847_v10 = vld [vmem:[%s2060_s3 + $0x8] sm:$0xff]  ;;  %vm91_vm0 = vcmask 130048   ;;  %v259_v32 = vlaneseq }
  0x12   :  { %s1462_s28 = sld [smem:[#allocation4 + $0x3]]  ;;  %1585 = vmatprep.subr.mxu1 %v1841_v9  ;;  %v1852_v11 = vld [vmem:[%s2061_s4 + $0x10] sm:$0xff]  ;;  %v1857_v12 = vld [vmem:[%s2060_s3] sm:$0xff]  ;;  %1579 = vmatpush3.msra.mxu0 %v1847_v10  ;;  %v1869_v14 = vld [vmem:[%s2061_s4 + $0x8] sm:$0xff]  ;;  %vm1793_vm1 = vmmov 0   ;;  %s1794_s3 = smov 96  }
  0x13   :  { %s1463_s29 = sld [smem:[#allocation4 + $0x4]]  ;;  %1586 = vmatpush3.msra.mxu1 %v1841_v9  ;;  %1580 = vmatprep.subr.mxu0 %v1792_v0  ;;  %v90_v13 = vld [vmem:[%s2058_s1] sm:$0x1]  ;;  %vm82_vm2 = vcmask 261120   ;;  %vm169_vm3 = vcmask 1040384   ;;  %v260_v33 = vshrl.u32 %v259_v32, 7 }
  0x14   :  { %s1464_s30 = sld [smem:[#allocation4 + $0x5]]  ;;  %1587 = vmatprep.subr.mxu1 %v1852_v11  ;;  %1581 = vmatpush3.msra.mxu0 %v1857_v12  ;;  %v1879_v17 = vld [vmem:[%s2061_s4] sm:$0xff]  ;;  %vm286_vm4 = vcmask 1046528   ;;  %vm291_vm5 = vcmask 1048320   ;;  %vm311_vm6 = vcmask 523264  }
  0x15   :  { %s1465_s7 = sld [smem:[#allocation4 + $0x6]]  ;;  %s37_s9 = scalar_lea.vmem [#allocation5], %s36_s26  ;;  %1582 = vmatprep.mubr.msk.f32.mxu0 %vm1793_vm1, %v1792_v0  ;;  %1588 = vmatpush3.msra.mxu1 %v1852_v11  ;;  %v76_v18 = vld [vmem:[%s2059_s2] sm:$0xff]  ;;  %v1914_v36 = vsub.s32 0, %v260_v33 }
  0x16   :  { %s1466_s8 = sld [smem:[#allocation4 + $0x7]]  ;;  %s42_s10 = scalar_lea.vmem [#allocation5], %s1460_s27  ;;  %1583 = vmatmul.mubr.msk.f32.vlgmr.msra.gmra.mxu0 %vm91_vm0, %v90_v13  ;;  %1589 = vmatprep.subr.mxu1 %v1869_v14  ;;  %v1911_v34 = vld [vmem:[%s2062_s5] sm:$0x1] }
  0x17   :  { %v38_v1 = vld [vmem:[%s37_s9] sm:$0x1]  ;;  %s47_s11 = scalar_lea.vmem [#allocation5], %s1461_s0  ;;  %1590 = vmatpush3.msra.mxu1 %v1869_v14  ;;  %1596 = vmatprep.subr.mxu0 %v1792_v0  ;;  %s1795_s5 = smov 64  }
  0x18   :  { %v43_v2 = vld [vmem:[%s42_s10] sm:$0x1]  ;;  %39 = vst [vmem:[#allocation2] sm:$0x1] %v38_v1  ;;  %s52_s12 = scalar_lea.vmem [#allocation5], %s1462_s28  ;;  %1591 = vmatprep.subr.mxu1 %v1879_v17  ;;  %1597 = vmatpush3.msra.mxu0 %v1847_v10  ;;  %s1796_s9 = smov 32  }
  0x19   :  { %44 = vst [vmem:[#allocation2 + $0x1] sm:$0x1] %v43_v2  ;;  %v48_v3 = vld [vmem:[%s47_s11] sm:$0x1]  ;;  %s57_s13 = scalar_lea.vmem [#allocation5], %s1463_s29  ;;  %1592 = vmatpush3.msra.mxu1 %v1879_v17  ;;  %1598 = vmatprep.subr.mxu0 %v1792_v0  ;;  %s1473_s10 = sld [smem:[#allocation4 + $0x8]] }
  0x1a   :  { %49 = vst [vmem:[#allocation2 + $0x2] sm:$0x1] %v48_v3  ;;  %v53_v4 = vld [vmem:[%s52_s12] sm:$0x1]  ;;  %s62_s14 = scalar_lea.vmem [#allocation5], %s1464_s30  ;;  %1600 = vmatprep.mubr.msk.f32.mxu0 %vm1793_vm1, %v1792_v0  ;;  %1599 = vmatpush3.msra.mxu0 %v1857_v12  ;;  %s1474_s11 = sld [smem:[#allocation4 + $0x9]] }
  0x1b   :  { %54 = vst [vmem:[#allocation2 + $0x3] sm:$0x1] %v53_v4  ;;  %v58_v5 = vld [vmem:[%s57_s13] sm:$0x1]  ;;  %s67_s15 = scalar_lea.vmem [#allocation5], %s1465_s7  ;;  %1614 = vmatprep.subr.mxu1 %v1792_v0  ;;  %1603 = vmatprep.subr.mxu0 %v1841_v9  ;;  %s1475_s12 = sld [smem:[#allocation4 + $0xa]] }
  0x1c   :  { %59 = vst [vmem:[#allocation2 + $0x4] sm:$0x1] %v58_v5  ;;  %v63_v6 = vld [vmem:[%s62_s14] sm:$0x1]  ;;  %s72_s16 = scalar_lea.vmem [#allocation5], %s1466_s8  ;;  %s1476_s13 = sld [smem:[#allocation4 + $0xb]] }
  0x1d   :  { %64 = vst [vmem:[#allocation2 + $0x5] sm:$0x1] %v63_v6  ;;  %v68_v7 = vld [vmem:[%s67_s15] sm:$0x1]  ;;  %s1477_s14 = sld [smem:[#allocation4 + $0xc]] }
  0x1e   :  { %69 = vst [vmem:[#allocation2 + $0x6] sm:$0x1] %v68_v7  ;;  %v73_v8 = vld [vmem:[%s72_s16] sm:$0x1]  ;;  %s1478_s15 = sld [smem:[#allocation4 + $0xd]] }
  0x1f   :  { %74 = vst [vmem:[#allocation2 + $0x7] sm:$0x1] %v73_v8  ;;  %s1479_s16 = sld [smem:[#allocation4 + $0xe]]  ;;  %s315_s18 = scalar_lea.vmem [#allocation5], %s1473_s10 }
  0x20   :  { %s1480_s17 = sld [smem:[#allocation4 + $0xf]]  ;;  %s320_s19 = scalar_lea.vmem [#allocation5], %s1474_s11 }
  0x21   :  { %s325_s20 = scalar_lea.vmem [#allocation5], %s1475_s12  ;;  %s1488_s29 = sld [smem:[#allocation4 + $0x10]] }
  0x22   :  { %s330_s21 = scalar_lea.vmem [#allocation5], %s1476_s13  ;;  %s1489_s4 = sld [smem:[#allocation4 + $0x11]] }
  0x23   :  { %s335_s22 = scalar_lea.vmem [#allocation5], %s1477_s14  ;;  %s1490_s30 = sld [smem:[#allocation4 + $0x12]] }
  0x24   :  { %s340_s23 = scalar_lea.vmem [#allocation5], %s1478_s15  ;;  %s1491_s7 = sld [smem:[#allocation4 + $0x13]] }
  0x25   :  { %s345_s24 = scalar_lea.vmem [#allocation5], %s1479_s16  ;;  %s1492_s8 = sld [smem:[#allocation4 + $0x14]] }
  0x26   :  { %v75_v15 = vld [vmem:[#allocation2] sm:$0xff]  ;;  %s350_s25 = scalar_lea.vmem [#allocation5], %s1480_s17  ;;  %s1493_s10 = sld [smem:[#allocation4 + $0x15]] }
  0x27   :  { %78 = vrot.lane.b32.xlu0 %v75_v15, %s1794_s3  ;;  %v165_v16 = vrot.slane %v75_v15, 7  ;;  %s1494_s11 = sld [smem:[#allocation4 + $0x16]]  ;;  %s588_s13 = scalar_lea.vmem [#allocation5], %s1488_s29 }
  0x28   :  { %s1495_s12 = sld [smem:[#allocation4 + $0x17]]  ;;  %s593_s14 = scalar_lea.vmem [#allocation5], %s1489_s4 }
  0x29   :  { %s598_s15 = scalar_lea.vmem [#allocation5], %s1490_s30  ;;  %s1504_s26 = sld [smem:[#allocation4 + $0x19]] }
  0x2a   :  { %s603_s16 = scalar_lea.vmem [#allocation5], %s1491_s7  ;;  %s1505_s27 = sld [smem:[#allocation4 + $0x1a]] }
  0x2b   :  { %166 = vrot.lane.b32.xlu0 %v165_v16, %s1794_s3  ;;  %s608_s17 = scalar_lea.vmem [#allocation5], %s1492_s8  ;;  %s1506_s0 = sld [smem:[#allocation4 + $0x1b]] }
  0x2c   :  { %s1507_s28 = sld [smem:[#allocation4 + $0x1c]] }
  0x2d   :  { %s1508_s29 = sld [smem:[#allocation4 + $0x1d]] }
  0x2e   :  { %s1509_s4 = sld [smem:[#allocation4 + $0x1e]] }
  0x2f   :  { %s1510_s30 = sld [smem:[#allocation4 + $0x1f]]  ;;  %s866_s8 = scalar_lea.vmem [#allocation5], %s1504_s26 }
  0x30   :  { %s1524_s26 = sld [smem:[#allocation4 + $0x26]] }
  0x99   :  { %v79_v19 = vpop.permute.xlu0 %78 }
  0x9a   :  { %v81_v20 = vmul.f32 %v79_v19, %v76_v18 }
  0x9c   :  { %v83_v21 = vsel %vm82_vm2, %v81_v20, 0.0 }
  0x9d   :  { %v84_v22 = vrot.slane %v83_v21, 4  ;;  %v167_v27 = vpop.permute.xlu0 %166 }
  0x9f   :  { %v85_v23 = vadd.f32 %v84_v22, %v83_v21 }
  0xa1   :  { %v86_v24 = vrot.slane %v85_v23, 2 }
  0xa3   :  { %v87_v25 = vadd.f32 %v86_v24, %v85_v23 }
  0xa5   :  { %v88_v26 = vrot.slane %v87_v25, 1 }
  0xa7   :  { %v89_v28 = vadd.f32 %v88_v26, %v87_v25 }
  0xa9   :  { %v170_v29 = vsel %vm169_vm3, %v89_v28, %v167_v27  ;;  %v368_v28 = vld [vmem:[%s2058_s1 + $0x1] sm:$0x1] }
  0xaa   :  { %1593 = vmatprep.mubr.msk.f32.mxu1 %vm82_vm2, %v170_v29  ;;  %1601 = vmatmul.mubr.msk.f32.vlgmr.msra.gmra.mxu0 %vm91_vm0, %v368_v28 }
  0xab   :  { %1594 = vmatmul.mubr.msk.f32.vlgmr.msra.gmra.mxu1 %vm82_vm2, %v167_v27  ;;  %1604 = vmatpush3.msra.mxu0 %v1841_v9 }
  0xac   :  { %1615 = vmatpush3.msra.mxu1 %v1847_v10  ;;  %1618 = vmatprep.mubr.msk.f32.mxu1 %vm1793_vm1, %v1792_v0 }
  0xad   :  { %1616 = vmatprep.subr.mxu1 %v1792_v0  ;;  %1605 = vmatprep.subr.mxu0 %v1852_v11 }
  0xae   :  { %1617 = vmatpush3.msra.mxu1 %v1857_v12  ;;  %1606 = vmatpush3.msra.mxu0 %v1852_v11 }
  0xaf   :  { %1621 = vmatprep.subr.mxu1 %v1841_v9  ;;  %1607 = vmatprep.subr.mxu0 %v1869_v14 }
  0xb0   :  { %1608 = vmatpush3.msra.mxu0 %v1869_v14 }
  0xb1   :  { %1609 = vmatprep.subr.mxu0 %v1879_v17 }
  0xb2   :  { %1610 = vmatpush3.msra.mxu0 %v1879_v17 }
  0xb3   :  { %1632 = vmatprep.subr.mxu0 %v1792_v0 }
  0xd6   :  { %v161_v30 = vpop.f32.mrf.mxu0 }
  0xd7   :  { %v162_v35 = vadd.f32 %v161_v30, %v1911_v34 }
  0xd8   :  { %v1584_v31 = vpop.f32.mrf.mxu0 }
  0xd9   :  { %v262_v37 = vrot.slane %v162_v35, %v1914_v36  ;;  %v1481_v31 = vld [vmem:[%s2059_s2 + $0x8] sm:$0xff] }
 0x16b   :  { %v1595_v38 = vpop.f32.mrf.mxu1 }
 0x16c   :  { %v264_v39 = vadd.f32 %v1595_v38, %v262_v37 }
 0x16d   :  { %v242_v40 = vpop.f32.mrf.mxu1 }
 0x16e   :  { %v1472_v41 = vmul.f32 -1.442695, %v264_v39  ;;  %v251_v42 = vadd.f32 %v242_v40, %v162_v35  ;;  %v263_v43 = vadd.f32 %v262_v37, %v242_v40 }
 0x170   :  { %1675 = vpow2.f32 %v1472_v41  ;;  %v1471_v44 = vmul.f32 -1.442695, %v263_v43  ;;  %v1470_v1 = vmul.f32 -1.442695, %v251_v42 }
 0x171   :  { %1677 = vtanh.f32 %v251_v42 }
 0x172   :  { %1679 = vpow2.f32 %v1471_v44 }
 0x17d   :  { %v1676_v45 = vpop.eup %1675 }
 0x17e   :  { %v1678_v46 = vpop.eup %1677  ;;  %v272_v47 = vadd.f32 1.0, %v1676_v45  ;;  %v438_v45 = vpop.f32.mrf.mxu0 }
 0x17f   :  { %278 = vrot.lane.b32.xlu1 %v1678_v46, %s1795_s5  ;;  %v1680_v48 = vpop.eup %1679 }
 0x180   :  { %1681 = vrcp.f32 %v272_v47  ;;  %v271_v49 = vadd.f32 1.0, %v1680_v48  ;;  %v1602_v46 = vpop.f32.mrf.mxu0  ;;  %v439_v47 = vadd.f32 %v438_v45, %v1911_v34 }
 0x182   :  { %1683 = vrcp.f32 %v271_v49  ;;  %v538_v48 = vrot.slane %v439_v47, %v1914_v36 }
 0x183   :  { %1685 = vpow2.f32 %v1470_v1 }
 0x18d   :  { %v1682_v50 = vpop.eup %1681 }
 0x18e   :  { %v283_v51 = vmul.f32 %v1682_v50, %v167_v27 }
 0x18f   :  { %v1684_v52 = vpop.eup %1683 }
 0x190   :  { %v282_v53 = vmul.f32 %v1684_v52, %v167_v27  ;;  %v288_v55 = vrot.slane %v283_v51, 1  ;;  %v1686_v2 = vpop.eup %1685 }
 0x191   :  { %v255_v3 = vadd.f32 1.0, %v1686_v2 }
 0x192   :  { %v287_v54 = vrot.slane %v282_v53, 1 }
 0x193   :  { %1687 = vrcp.f32 %v255_v3 }
 0x194   :  { %v289_v56 = vsel %vm286_vm4, %v287_v54, %v288_v55 }
 0x195   :  { %v292_v57 = vsel %vm291_vm5, %v289_v56, 0.0 }
 0x196   :  { %v293_v58 = vrot.slane %v292_v57, 4 }
 0x198   :  { %v294_v59 = vadd.f32 %v293_v58, %v292_v57 }
 0x19a   :  { %v295_v60 = vrot.slane %v294_v59, 2 }
 0x19c   :  { %v296_v61 = vadd.f32 %v295_v60, %v294_v59 }
 0x19e   :  { %v297_v62 = vrot.slane %v296_v61, 1 }
 0x1a0   :  { %v298_v63 = vadd.f32 %v297_v62, %v296_v61  ;;  %v1688_v5 = vpop.eup %1687 }
 0x1a2   :  { %300 = vrot.lane.b32.xlu1 %v298_v63, %s1796_s9 }
 0x1f1   :  { %v279_v4 = vpop.permute.xlu1 %278 }
 0x1f2   :  { %v281_v6 = vmul.f32 %v1688_v5, %v279_v4 }
 0x214   :  { %v301_v7 = vpop.permute.xlu1 %300 }
 0x215   :  { %v303_v8 = vadd.f32 %v301_v7, %v281_v6 }
 0x217   :  { %1689 = vtanh.f32 %v303_v8 }
 0x224   :  { %v1690_v13 = vpop.eup %1689 }
 0x225   :  { %306 = vrot.lane.b32.xlu0 %v1690_v13, %s1796_s9 }
 0x297   :  { %v307_v15 = vpop.permute.xlu0 %306 }
 0x298   :  { %v309_v16 = vmul.f32 %v1688_v5, %v307_v15 }
 0x29a   :  { %v310_v18 = vsel %vm82_vm2, %v303_v8, %v309_v16 }
 0x29b   :  { %v312_v19 = vsel %vm311_vm6, %v310_v18, 0.0 }
 0x29c   :  { %313 = vst [vmem:[#allocation5] sm:$0x1] %v312_v19 }
 0x2a3   :  { %v316_v20 = vld [vmem:[%s315_s18] sm:$0x1]  ;;  %s613_s18 = scalar_lea.vmem [#allocation5], %s1493_s10  ;;  %s871_s10 = scalar_lea.vmem [#allocation5], %s1505_s27 }
 0x2a4   :  { %v321_v21 = vld [vmem:[%s320_s19] sm:$0x1]  ;;  %317 = vst [vmem:[#allocation2] sm:$0x1] %v316_v20  ;;  %s618_s19 = scalar_lea.vmem [#allocation5], %s1494_s11  ;;  %s876_s11 = scalar_lea.vmem [#allocation5], %s1506_s0 }
 0x2a5   :  { %v326_v22 = vld [vmem:[%s325_s20] sm:$0x1]  ;;  %322 = vst [vmem:[#allocation2 + $0x1] sm:$0x1] %v321_v21  ;;  %s623_s20 = scalar_lea.vmem [#allocation5], %s1495_s12  ;;  %s881_s12 = scalar_lea.vmem [#allocation5], %s1507_s28 }
 0x2a6   :  { %327 = vst [vmem:[#allocation2 + $0x2] sm:$0x1] %v326_v22  ;;  %v331_v23 = vld [vmem:[%s330_s21] sm:$0x1]  ;;  %s1519_s21 = sld [smem:[#allocation4 + $0x21]] }
 0x2a7   :  { %v336_v24 = vld [vmem:[%s335_s22] sm:$0x1]  ;;  %332 = vst [vmem:[#allocation2 + $0x3] sm:$0x1] %v331_v23  ;;  %s1520_s22 = sld [smem:[#allocation4 + $0x22]] }
 0x2a8   :  { %v341_v25 = vld [vmem:[%s340_s23] sm:$0x1]  ;;  %337 = vst [vmem:[#allocation2 + $0x4] sm:$0x1] %v336_v24  ;;  %s1521_s23 = sld [smem:[#allocation4 + $0x23]] }
 0x2a9   :  { %342 = vst [vmem:[#allocation2 + $0x5] sm:$0x1] %v341_v25  ;;  %v346_v26 = vld [vmem:[%s345_s24] sm:$0x1]  ;;  %s1522_s24 = sld [smem:[#allocation4 + $0x24]] }
 0x2aa   :  { %v351_v27 = vld [vmem:[%s350_s25] sm:$0x1]  ;;  %347 = vst [vmem:[#allocation2 + $0x6] sm:$0x1] %v346_v26  ;;  %s1503_s25 = sld [smem:[#allocation4 + $0x18]] }
 0x2ab   :  { %352 = vst [vmem:[#allocation2 + $0x7] sm:$0x1] %v351_v27  ;;  %s1525_s27 = sld [smem:[#allocation4 + $0x27]] }
 0x2ac   :  { %s1139_s28 = scalar_lea.vmem [#allocation5], %s1519_s21 }
 0x2b0   :  { %s861_s7 = scalar_lea.vmem [#allocation5], %s1503_s25  ;;  %s1523_s25 = sld [smem:[#allocation4 + $0x25]] }
 0x2b2   :  { %v353_v29 = vld [vmem:[#allocation2] sm:$0xff] }
 0x2b3   :  { %357 = vrot.lane.b32.xlu1 %v353_v29, %s1794_s3  ;;  %v442_v30 = vrot.slane %v353_v29, 7 }
 0x2b5   :  { %443 = vrot.lane.b32.xlu0 %v442_v30, %s1794_s3 }
 0x325   :  { %v358_v32 = vpop.permute.xlu1 %357 }
 0x326   :  { %v360_v33 = vmul.f32 %v1481_v31, %v358_v32 }
 0x327   :  { %v444_v43 = vpop.permute.xlu0 %443 }
 0x328   :  { %v361_v35 = vsel %vm82_vm2, %v360_v33, 0.0 }
 0x329   :  { %v362_v37 = vrot.slane %v361_v35, 4 }
 0x32b   :  { %v363_v38 = vadd.f32 %v362_v37, %v361_v35 }
 0x32d   :  { %v364_v39 = vrot.slane %v363_v38, 2 }
 0x32f   :  { %v365_v40 = vadd.f32 %v364_v39, %v363_v38 }
 0x331   :  { %v366_v41 = vrot.slane %v365_v40, 1 }
 0x333   :  { %v367_v42 = vadd.f32 %v366_v41, %v365_v40  ;;  %v641_v41 = vld [vmem:[%s2058_s1 + $0x2] sm:$0x1] }
 0x334   :  { %1619 = vmatmul.mubr.msk.f32.vlgmr.msra.gmra.mxu1 %vm91_vm0, %v641_v41 }
 0x335   :  { %v446_v44 = vsel %vm169_vm3, %v367_v42, %v444_v43  ;;  %1622 = vmatpush3.msra.mxu1 %v1841_v9 }
 0x336   :  { %1611 = vmatprep.mubr.msk.f32.mxu0 %vm82_vm2, %v446_v44  ;;  %1623 = vmatprep.subr.mxu1 %v1852_v11  ;;  %v1496_v44 = vld [vmem:[%s2059_s2 + $0x10] sm:$0xff] }
 0x337   :  { %1612 = vmatmul.mubr.msk.f32.vlgmr.msra.gmra.mxu0 %vm82_vm2, %v444_v43  ;;  %1624 = vmatpush3.msra.mxu1 %v1852_v11 }
 0x338   :  { %1633 = vmatpush3.msra.mxu0 %v1847_v10  ;;  %1636 = vmatprep.mubr.msk.f32.mxu0 %vm1793_vm1, %v1792_v0 }
 0x339   :  { %1634 = vmatprep.subr.mxu0 %v1792_v0  ;;  %1625 = vmatprep.subr.mxu1 %v1869_v14 }
 0x33a   :  { %1635 = vmatpush3.msra.mxu0 %v1857_v12  ;;  %1626 = vmatpush3.msra.mxu1 %v1869_v14 }
 0x33b   :  { %1639 = vmatprep.subr.mxu0 %v1841_v9  ;;  %1627 = vmatprep.subr.mxu1 %v1879_v17 }
 0x33c   :  { %1628 = vmatpush3.msra.mxu1 %v1879_v17 }
 0x33d   :  { %1650 = vmatprep.subr.mxu1 %v1792_v0 }
 0x3f7   :  { %v1613_v49 = vpop.f32.mrf.mxu0 }
 0x3f8   :  { %v540_v50 = vadd.f32 %v1613_v49, %v538_v48 }
 0x3f9   :  { %v518_v51 = vpop.f32.mrf.mxu0 }
 0x3fa   :  { %v1487_v52 = vmul.f32 -1.442695, %v540_v50  ;;  %v527_v53 = vadd.f32 %v518_v51, %v439_v47  ;;  %v539_v54 = vadd.f32 %v538_v48, %v518_v51 }
 0x3fc   :  { %1691 = vpow2.f32 %v1487_v52  ;;  %v1486_v55 = vmul.f32 -1.442695, %v539_v54  ;;  %v1485_v18 = vmul.f32 -1.442695, %v527_v53 }
 0x3fd   :  { %1693 = vtanh.f32 %v527_v53 }
 0x3fe   :  { %1695 = vpow2.f32 %v1486_v55 }
 0x409   :  { %v1692_v56 = vpop.eup %1691 }
 0x40a   :  { %v1694_v57 = vpop.eup %1693  ;;  %v548_v58 = vadd.f32 1.0, %v1692_v56  ;;  %v711_v56 = vpop.f32.mrf.mxu1 }
 0x40b   :  { %554 = vrot.lane.b32.xlu1 %v1694_v57, %s1795_s5  ;;  %v1696_v59 = vpop.eup %1695 }
 0x40c   :  { %1697 = vrcp.f32 %v548_v58  ;;  %v547_v60 = vadd.f32 1.0, %v1696_v59  ;;  %v1620_v57 = vpop.f32.mrf.mxu1  ;;  %v712_v58 = vadd.f32 %v711_v56, %v1911_v34 }
 0x40e   :  { %1699 = vrcp.f32 %v547_v60  ;;  %v811_v59 = vrot.slane %v712_v58, %v1914_v36 }
 0x40f   :  { %1701 = vpow2.f32 %v1485_v18 }
 0x419   :  { %v1698_v61 = vpop.eup %1697 }
 0x41a   :  { %v559_v62 = vmul.f32 %v1698_v61, %v444_v43 }
 0x41b   :  { %v1700_v63 = vpop.eup %1699 }
 0x41c   :  { %v558_v1 = vmul.f32 %v1700_v63, %v444_v43  ;;  %v563_v3 = vrot.slane %v559_v62, 1  ;;  %v1702_v19 = vpop.eup %1701 }
 0x41d   :  { %v531_v20 = vadd.f32 1.0, %v1702_v19 }
 0x41e   :  { %v562_v2 = vrot.slane %v558_v1, 1 }
 0x41f   :  { %1703 = vrcp.f32 %v531_v20 }
 0x420   :  { %v564_v4 = vsel %vm286_vm4, %v562_v2, %v563_v3 }
 0x421   :  { %v566_v5 = vsel %vm291_vm5, %v564_v4, 0.0 }
 0x422   :  { %v567_v6 = vrot.slane %v566_v5, 4 }
 0x424   :  { %v568_v7 = vadd.f32 %v567_v6, %v566_v5 }
 0x426   :  { %v569_v8 = vrot.slane %v568_v7, 2 }
 0x428   :  { %v570_v13 = vadd.f32 %v569_v8, %v568_v7 }
 0x42a   :  { %v571_v15 = vrot.slane %v570_v13, 1 }
 0x42c   :  { %v572_v16 = vadd.f32 %v571_v15, %v570_v13  ;;  %v1704_v22 = vpop.eup %1703 }
 0x42e   :  { %574 = vrot.lane.b32.xlu0 %v572_v16, %s1796_s9 }
 0x47d   :  { %v555_v21 = vpop.permute.xlu1 %554 }
 0x47e   :  { %v557_v23 = vmul.f32 %v1704_v22, %v555_v21 }
 0x4a0   :  { %v575_v24 = vpop.permute.xlu0 %574 }
 0x4a1   :  { %v577_v25 = vadd.f32 %v575_v24, %v557_v23 }
 0x4a3   :  { %1705 = vtanh.f32 %v577_v25 }
 0x4b0   :  { %v1706_v26 = vpop.eup %1705 }
 0x4b1   :  { %580 = vrot.lane.b32.xlu1 %v1706_v26, %s1796_s9 }
 0x523   :  { %v581_v27 = vpop.permute.xlu1 %580 }
 0x524   :  { %v583_v28 = vmul.f32 %v1704_v22, %v581_v27 }
 0x526   :  { %v584_v29 = vsel %vm82_vm2, %v577_v25, %v583_v28 }
 0x527   :  { %v585_v30 = vsel %vm311_vm6, %v584_v29, 0.0 }
 0x528   :  { %586 = vst [vmem:[#allocation5 + $0x1] sm:$0x1] %v585_v30 }
 0x52f   :  { %v589_v31 = vld [vmem:[%s588_s13] sm:$0x1]  ;;  %s886_s13 = scalar_lea.vmem [#allocation5], %s1508_s29  ;;  %s1144_s29 = scalar_lea.vmem [#allocation5], %s1520_s22 }
 0x530   :  { %v594_v32 = vld [vmem:[%s593_s14] sm:$0x1]  ;;  %590 = vst [vmem:[#allocation2] sm:$0x1] %v589_v31  ;;  %s891_s14 = scalar_lea.vmem [#allocation5], %s1509_s4  ;;  %s1149_s4 = scalar_lea.vmem [#allocation5], %s1521_s23 }
 0x531   :  { %v599_v33 = vld [vmem:[%s598_s15] sm:$0x1]  ;;  %595 = vst [vmem:[#allocation2 + $0x1] sm:$0x1] %v594_v32  ;;  %s896_s15 = scalar_lea.vmem [#allocation5], %s1510_s30  ;;  %s1154_s30 = scalar_lea.vmem [#allocation5], %s1522_s24 }
 0x532   :  { %600 = vst [vmem:[#allocation2 + $0x2] sm:$0x1] %v599_v33  ;;  %v604_v35 = vld [vmem:[%s603_s16] sm:$0x1] }
 0x533   :  { %v609_v37 = vld [vmem:[%s608_s17] sm:$0x1]  ;;  %605 = vst [vmem:[#allocation2 + $0x3] sm:$0x1] %v604_v35 }
 0x534   :  { %v614_v38 = vld [vmem:[%s613_s18] sm:$0x1]  ;;  %610 = vst [vmem:[#allocation2 + $0x4] sm:$0x1] %v609_v37 }
 0x535   :  { %615 = vst [vmem:[#allocation2 + $0x5] sm:$0x1] %v614_v38  ;;  %v619_v39 = vld [vmem:[%s618_s19] sm:$0x1] }
 0x536   :  { %v624_v40 = vld [vmem:[%s623_s20] sm:$0x1]  ;;  %620 = vst [vmem:[#allocation2 + $0x6] sm:$0x1] %v619_v39  ;;  %s1518_s20 = sld [smem:[#allocation4 + $0x20]] }
 0x537   :  { %625 = vst [vmem:[#allocation2 + $0x7] sm:$0x1] %v624_v40 }
 0x53c   :  { %s1134_s0 = scalar_lea.vmem [#allocation5], %s1518_s20 }
 0x53e   :  { %v626_v42 = vld [vmem:[#allocation2] sm:$0xff] }
 0x53f   :  { %630 = vrot.lane.b32.xlu0 %v626_v42, %s1794_s3  ;;  %v715_v43 = vrot.slane %v626_v42, 7 }
 0x541   :  { %716 = vrot.lane.b32.xlu1 %v715_v43, %s1794_s3 }
 0x5b1   :  { %v631_v45 = vpop.permute.xlu0 %630 }
 0x5b2   :  { %v633_v46 = vmul.f32 %v1496_v44, %v631_v45 }
 0x5b3   :  { %v717_v54 = vpop.permute.xlu1 %716 }
 0x5b4   :  { %v634_v47 = vsel %vm82_vm2, %v633_v46, 0.0 }
 0x5b5   :  { %v635_v48 = vrot.slane %v634_v47, 4 }
 0x5b7   :  { %v636_v49 = vadd.f32 %v635_v48, %v634_v47 }
 0x5b9   :  { %v637_v50 = vrot.slane %v636_v49, 2 }
 0x5bb   :  { %v638_v51 = vadd.f32 %v637_v50, %v636_v49  ;;  %v914_v49 = vld [vmem:[%s2058_s1 + $0x3] sm:$0x1] }
 0x5bc   :  { %1637 = vmatmul.mubr.msk.f32.vlgmr.msra.gmra.mxu0 %vm91_vm0, %v914_v49 }
 0x5bd   :  { %v639_v52 = vrot.slane %v638_v51, 1  ;;  %1640 = vmatpush3.msra.mxu0 %v1841_v9 }
 0x5be   :  { %1641 = vmatprep.subr.mxu0 %v1852_v11 }
 0x5bf   :  { %v640_v53 = vadd.f32 %v639_v52, %v638_v51  ;;  %1642 = vmatpush3.msra.mxu0 %v1852_v11  ;;  %v1511_v52 = vld [vmem:[%s2059_s2 + $0x18] sm:$0xff] }
 0x5c0   :  { %1643 = vmatprep.subr.mxu0 %v1869_v14 }
 0x5c1   :  { %v719_v55 = vsel %vm169_vm3, %v640_v53, %v717_v54  ;;  %1644 = vmatpush3.msra.mxu0 %v1869_v14 }
 0x5c2   :  { %1629 = vmatprep.mubr.msk.f32.mxu1 %vm82_vm2, %v719_v55  ;;  %1645 = vmatprep.subr.mxu0 %v1879_v17 }
 0x5c3   :  { %1630 = vmatmul.mubr.msk.f32.vlgmr.msra.gmra.mxu1 %vm82_vm2, %v717_v54  ;;  %1646 = vmatpush3.msra.mxu0 %v1879_v17 }
 0x5c4   :  { %1651 = vmatpush3.msra.mxu1 %v1847_v10  ;;  %1654 = vmatprep.mubr.msk.f32.mxu1 %vm1793_vm1, %v1792_v0 }
 0x5c5   :  { %1652 = vmatprep.subr.mxu1 %v1792_v0 }
 0x5c6   :  { %1653 = vmatpush3.msra.mxu1 %v1857_v12 }
 0x5c7   :  { %1657 = vmatprep.subr.mxu1 %v1841_v9 }
 0x683   :  { %v1631_v60 = vpop.f32.mrf.mxu1 }
 0x684   :  { %v813_v61 = vadd.f32 %v1631_v60, %v811_v59 }
 0x685   :  { %v791_v62 = vpop.f32.mrf.mxu1 }
 0x686   :  { %v1502_v63 = vmul.f32 -1.442695, %v813_v61  ;;  %v800_v10 = vadd.f32 %v791_v62, %v712_v58  ;;  %v812_v1 = vadd.f32 %v811_v59, %v791_v62 }
 0x688   :  { %1707 = vpow2.f32 %v1502_v63  ;;  %v1501_v2 = vmul.f32 -1.442695, %v812_v1  ;;  %v1500_v26 = vmul.f32 -1.442695, %v800_v10 }
 0x689   :  { %1709 = vtanh.f32 %v800_v10  ;;  %v984_v10 = vpop.f32.mrf.mxu0 }
 0x68a   :  { %1711 = vpow2.f32 %v1501_v2  ;;  %v985_v2 = vadd.f32 %v984_v10, %v1911_v34 }
 0x68b   :  { %v1638_v1 = vpop.f32.mrf.mxu0 }
 0x695   :  { %v1708_v0 = vpop.eup %1707 }
 0x696   :  { %v1710_v12 = vpop.eup %1709  ;;  %v821_v3 = vadd.f32 1.0, %v1708_v0  ;;  %v1084_v0 = vrot.slane %v985_v2, %v1914_v36 }
 0x697   :  { %827 = vrot.lane.b32.xlu0 %v1710_v12, %s1795_s5  ;;  %v1712_v4 = vpop.eup %1711 }
 0x698   :  { %1713 = vrcp.f32 %v821_v3  ;;  %v820_v5 = vadd.f32 1.0, %v1712_v4 }
 0x69a   :  { %1715 = vrcp.f32 %v820_v5 }
 0x69b   :  { %1717 = vpow2.f32 %v1500_v26 }
 0x6a5   :  { %v1714_v6 = vpop.eup %1713 }
 0x6a6   :  { %v832_v7 = vmul.f32 %v1714_v6, %v717_v54 }
 0x6a7   :  { %v1716_v8 = vpop.eup %1715 }
 0x6a8   :  { %v831_v13 = vmul.f32 %v1716_v8, %v717_v54  ;;  %v836_v16 = vrot.slane %v832_v7, 1  ;;  %v1718_v27 = vpop.eup %1717 }
 0x6a9   :  { %v804_v28 = vadd.f32 1.0, %v1718_v27 }
 0x6aa   :  { %v835_v15 = vrot.slane %v831_v13, 1 }
 0x6ab   :  { %1719 = vrcp.f32 %v804_v28 }
 0x6ac   :  { %v837_v18 = vsel %vm286_vm4, %v835_v15, %v836_v16 }
 0x6ad   :  { %v839_v19 = vsel %vm291_vm5, %v837_v18, 0.0 }
 0x6ae   :  { %v840_v20 = vrot.slane %v839_v19, 4 }
 0x6b0   :  { %v841_v21 = vadd.f32 %v840_v20, %v839_v19 }
 0x6b2   :  { %v842_v22 = vrot.slane %v841_v21, 2 }
 0x6b4   :  { %v843_v23 = vadd.f32 %v842_v22, %v841_v21 }
 0x6b6   :  { %v844_v24 = vrot.slane %v843_v23, 1 }
 0x6b8   :  { %v845_v25 = vadd.f32 %v844_v24, %v843_v23  ;;  %v1720_v30 = vpop.eup %1719 }
 0x6ba   :  { %847 = vrot.lane.b32.xlu1 %v845_v25, %s1796_s9 }
 0x709   :  { %v828_v29 = vpop.permute.xlu0 %827 }
 0x70a   :  { %v830_v31 = vmul.f32 %v1720_v30, %v828_v29 }
 0x72c   :  { %v848_v32 = vpop.permute.xlu1 %847 }
 0x72d   :  { %v850_v33 = vadd.f32 %v848_v32, %v830_v31 }
 0x72f   :  { %1721 = vtanh.f32 %v850_v33 }
 0x73c   :  { %v1722_v35 = vpop.eup %1721 }
 0x73d   :  { %853 = vrot.lane.b32.xlu0 %v1722_v35, %s1796_s9 }
 0x7af   :  { %v854_v37 = vpop.permute.xlu0 %853 }
 0x7b0   :  { %v856_v38 = vmul.f32 %v1720_v30, %v854_v37 }
 0x7b2   :  { %v857_v39 = vsel %vm82_vm2, %v850_v33, %v856_v38 }
 0x7b3   :  { %v858_v40 = vsel %vm311_vm6, %v857_v39, 0.0 }
 0x7b4   :  { %859 = vst [vmem:[#allocation5 + $0x2] sm:$0x1] %v858_v40 }
 0x7bb   :  { %v862_v41 = vld [vmem:[%s861_s7] sm:$0x1]  ;;  %s1159_s7 = scalar_lea.vmem [#allocation5], %s1523_s25 }
 0x7bc   :  { %v867_v42 = vld [vmem:[%s866_s8] sm:$0x1]  ;;  %863 = vst [vmem:[#allocation2] sm:$0x1] %v862_v41  ;;  %s1164_s8 = scalar_lea.vmem [#allocation5], %s1524_s26 }
 0x7bd   :  { %v872_v43 = vld [vmem:[%s871_s10] sm:$0x1]  ;;  %868 = vst [vmem:[#allocation2 + $0x1] sm:$0x1] %v867_v42  ;;  %s1169_s10 = scalar_lea.vmem [#allocation5], %s1525_s27 }
 0x7be   :  { %873 = vst [vmem:[#allocation2 + $0x2] sm:$0x1] %v872_v43  ;;  %v877_v44 = vld [vmem:[%s876_s11] sm:$0x1] }
 0x7bf   :  { %v882_v45 = vld [vmem:[%s881_s12] sm:$0x1]  ;;  %878 = vst [vmem:[#allocation2 + $0x3] sm:$0x1] %v877_v44 }
 0x7c0   :  { %v887_v46 = vld [vmem:[%s886_s13] sm:$0x1]  ;;  %883 = vst [vmem:[#allocation2 + $0x4] sm:$0x1] %v882_v45 }
 0x7c1   :  { %888 = vst [vmem:[#allocation2 + $0x5] sm:$0x1] %v887_v46  ;;  %v892_v47 = vld [vmem:[%s891_s14] sm:$0x1] }
 0x7c2   :  { %v897_v48 = vld [vmem:[%s896_s15] sm:$0x1]  ;;  %893 = vst [vmem:[#allocation2 + $0x6] sm:$0x1] %v892_v47 }
 0x7c3   :  { %898 = vst [vmem:[#allocation2 + $0x7] sm:$0x1] %v897_v48 }
 0x7ca   :  { %v899_v50 = vld [vmem:[#allocation2] sm:$0xff] }
 0x7cb   :  { %903 = vrot.lane.b32.xlu1 %v899_v50, %s1794_s3  ;;  %v988_v51 = vrot.slane %v899_v50, 7 }
 0x7cd   :  { %989 = vrot.lane.b32.xlu0 %v988_v51, %s1794_s3 }
 0x83d   :  { %v904_v53 = vpop.permute.xlu1 %903 }
 0x83e   :  { %v906_v54 = vmul.f32 %v1511_v52, %v904_v53 }
 0x83f   :  { %v990_v62 = vpop.permute.xlu0 %989 }
 0x840   :  { %v907_v55 = vsel %vm82_vm2, %v906_v54, 0.0 }
 0x841   :  { %v908_v56 = vrot.slane %v907_v55, 4 }
 0x843   :  { %v909_v57 = vadd.f32 %v908_v56, %v907_v55 }
 0x845   :  { %v910_v58 = vrot.slane %v909_v57, 2 }
 0x847   :  { %v911_v59 = vadd.f32 %v910_v58, %v909_v57  ;;  %v1187_v57 = vld [vmem:[%s2058_s1 + $0x4] sm:$0x1] }
 0x848   :  { %1655 = vmatmul.mubr.msk.f32.vlgmr.msra.gmra.mxu1 %vm91_vm0, %v1187_v57 }
 0x849   :  { %v912_v60 = vrot.slane %v911_v59, 1  ;;  %1658 = vmatpush3.msra.mxu1 %v1841_v9  ;;  %v1526_v9 = vld [vmem:[%s2059_s2 + $0x20] sm:$0xff]  ;;  %s1797_s2 = smov [#allocation5]  }
 0x84a   :  { %1659 = vmatprep.subr.mxu1 %v1852_v11 }
 0x84b   :  { %v913_v61 = vadd.f32 %v912_v60, %v911_v59  ;;  %1660 = vmatpush3.msra.mxu1 %v1852_v11 }
 0x84c   :  { %1661 = vmatprep.subr.mxu1 %v1869_v14 }
 0x84d   :  { %v992_v63 = vsel %vm169_vm3, %v913_v61, %v990_v62  ;;  %1662 = vmatpush3.msra.mxu1 %v1869_v14 }
 0x84e   :  { %1647 = vmatprep.mubr.msk.f32.mxu0 %vm82_vm2, %v992_v63  ;;  %1663 = vmatprep.subr.mxu1 %v1879_v17 }
 0x84f   :  { %1648 = vmatmul.mubr.msk.f32.vlgmr.msra.gmra.mxu0 %vm82_vm2, %v990_v62  ;;  %1664 = vmatpush3.msra.mxu1 %v1879_v17 }
 0x908   :  { %v1257_v17 = vpop.f32.mrf.mxu1 }
 0x90f   :  { %v1649_v12 = vpop.f32.mrf.mxu0 }
 0x910   :  { %v1086_v3 = vadd.f32 %v1649_v12, %v1084_v0 }
 0x911   :  { %v1064_v4 = vpop.f32.mrf.mxu0 }
 0x912   :  { %v1517_v5 = vmul.f32 -1.442695, %v1086_v3  ;;  %v1073_v6 = vadd.f32 %v1064_v4, %v985_v2  ;;  %v1085_v7 = vadd.f32 %v1084_v0, %v1064_v4  ;;  %v1656_v3 = vpop.f32.mrf.mxu1  ;;  %v1258_v4 = vadd.f32 %v1257_v17, %v1911_v34 }
 0x914   :  { %1723 = vpow2.f32 %v1517_v5  ;;  %v1516_v8 = vmul.f32 -1.442695, %v1085_v7  ;;  %v1515_v35 = vmul.f32 -1.442695, %v1073_v6  ;;  %v1357_v5 = vrot.slane %v1258_v4, %v1914_v36 }
 0x915   :  { %1725 = vtanh.f32 %v1073_v6 }
 0x916   :  { %1727 = vpow2.f32 %v1516_v8 }
 0x921   :  { %v1724_v13 = vpop.eup %1723 }
 0x922   :  { %v1726_v15 = vpop.eup %1725  ;;  %v1094_v16 = vadd.f32 1.0, %v1724_v13 }
 0x923   :  { %1100 = vrot.lane.b32.xlu1 %v1726_v15, %s1795_s5  ;;  %v1728_v18 = vpop.eup %1727 }
 0x924   :  { %1729 = vrcp.f32 %v1094_v16  ;;  %v1093_v19 = vadd.f32 1.0, %v1728_v18 }
 0x926   :  { %1731 = vrcp.f32 %v1093_v19 }
 0x927   :  { %1733 = vpow2.f32 %v1515_v35 }
 0x931   :  { %v1730_v20 = vpop.eup %1729 }
 0x932   :  { %v1105_v21 = vmul.f32 %v1730_v20, %v990_v62 }
 0x933   :  { %v1732_v22 = vpop.eup %1731 }
 0x934   :  { %v1104_v23 = vmul.f32 %v1732_v22, %v990_v62  ;;  %v1109_v25 = vrot.slane %v1105_v21, 1  ;;  %v1734_v37 = vpop.eup %1733 }
 0x935   :  { %v1077_v38 = vadd.f32 1.0, %v1734_v37 }
 0x936   :  { %v1108_v24 = vrot.slane %v1104_v23, 1 }
 0x937   :  { %1735 = vrcp.f32 %v1077_v38 }
 0x938   :  { %v1110_v26 = vsel %vm286_vm4, %v1108_v24, %v1109_v25 }
 0x939   :  { %v1112_v27 = vsel %vm291_vm5, %v1110_v26, 0.0 }
 0x93a   :  { %v1113_v28 = vrot.slane %v1112_v27, 4 }
 0x93c   :  { %v1114_v29 = vadd.f32 %v1113_v28, %v1112_v27 }
 0x93e   :  { %v1115_v30 = vrot.slane %v1114_v29, 2 }
 0x940   :  { %v1116_v31 = vadd.f32 %v1115_v30, %v1114_v29 }
 0x942   :  { %v1117_v32 = vrot.slane %v1116_v31, 1 }
 0x944   :  { %v1118_v33 = vadd.f32 %v1117_v32, %v1116_v31  ;;  %v1736_v40 = vpop.eup %1735 }
 0x946   :  { %1120 = vrot.lane.b32.xlu0 %v1118_v33, %s1796_s9 }
 0x995   :  { %v1101_v39 = vpop.permute.xlu1 %1100 }
 0x996   :  { %v1103_v41 = vmul.f32 %v1736_v40, %v1101_v39 }
 0x9b8   :  { %v1121_v42 = vpop.permute.xlu0 %1120 }
 0x9b9   :  { %v1123_v43 = vadd.f32 %v1121_v42, %v1103_v41 }
 0x9bb   :  { %1737 = vtanh.f32 %v1123_v43 }
 0x9c8   :  { %v1738_v44 = vpop.eup %1737 }
 0x9c9   :  { %1126 = vrot.lane.b32.xlu1 %v1738_v44, %s1796_s9 }
 0xa3b   :  { %v1127_v45 = vpop.permute.xlu1 %1126 }
 0xa3c   :  { %v1129_v46 = vmul.f32 %v1736_v40, %v1127_v45 }
 0xa3e   :  { %v1130_v47 = vsel %vm82_vm2, %v1123_v43, %v1129_v46 }
 0xa3f   :  { %v1131_v48 = vsel %vm311_vm6, %v1130_v47, 0.0 }
 0xa40   :  { %1132 = vst [vmem:[#allocation5 + $0x3] sm:$0x1] %v1131_v48 }
 0xa47   :  { %v1135_v49 = vld [vmem:[%s1134_s0] sm:$0x1] }
 0xa48   :  { %v1140_v50 = vld [vmem:[%s1139_s28] sm:$0x1]  ;;  %1136 = vst [vmem:[#allocation2] sm:$0x1] %v1135_v49 }
 0xa49   :  { %v1145_v51 = vld [vmem:[%s1144_s29] sm:$0x1]  ;;  %1141 = vst [vmem:[#allocation2 + $0x1] sm:$0x1] %v1140_v50 }
 0xa4a   :  { %1146 = vst [vmem:[#allocation2 + $0x2] sm:$0x1] %v1145_v51  ;;  %v1150_v52 = vld [vmem:[%s1149_s4] sm:$0x1] }
 0xa4b   :  { %v1155_v53 = vld [vmem:[%s1154_s30] sm:$0x1]  ;;  %1151 = vst [vmem:[#allocation2 + $0x3] sm:$0x1] %v1150_v52 }
 0xa4c   :  { %v1160_v54 = vld [vmem:[%s1159_s7] sm:$0x1]  ;;  %1156 = vst [vmem:[#allocation2 + $0x4] sm:$0x1] %v1155_v53 }
 0xa4d   :  { %1161 = vst [vmem:[#allocation2 + $0x5] sm:$0x1] %v1160_v54  ;;  %v1165_v55 = vld [vmem:[%s1164_s8] sm:$0x1] }
 0xa4e   :  { %v1170_v56 = vld [vmem:[%s1169_s10] sm:$0x1]  ;;  %1166 = vst [vmem:[#allocation2 + $0x6] sm:$0x1] %v1165_v55 }
 0xa4f   :  { %1171 = vst [vmem:[#allocation2 + $0x7] sm:$0x1] %v1170_v56 }
 0xa56   :  { %v1172_v58 = vld [vmem:[#allocation2] sm:$0xff] }
 0xa57   :  { %1176 = vrot.lane.b32.xlu0 %v1172_v58, %s1794_s3  ;;  %v1261_v59 = vrot.slane %v1172_v58, 7 }
 0xa59   :  { %1262 = vrot.lane.b32.xlu1 %v1261_v59, %s1794_s3  ;;  %s1412_s3 = sshll.u32 %s1797_s2, 4  ;;  %s1413_s3 = int_to_ptr.vmem [resolvable:$true] %s1412_s3 }
 0xa5a   :  { %p1772_p6 = scmp.lt.s32.totalorder %s1413_s3, %s1413_s3 }
 0xac9   :  { %v1177_v60 = vpop.permute.xlu0 %1176 }
 0xaca   :  { %v1179_v11 = vmul.f32 %v1526_v9, %v1177_v60 }
 0xacb   :  { %v1263_v0 = vpop.permute.xlu1 %1262 }
 0xacc   :  { %v1180_v61 = vsel %vm82_vm2, %v1179_v11, 0.0 }
 0xacd   :  { %v1181_v62 = vrot.slane %v1180_v61, 4 }
 0xacf   :  { %v1182_v63 = vadd.f32 %v1181_v62, %v1180_v61 }
 0xad1   :  { %v1183_v10 = vrot.slane %v1182_v63, 2 }
 0xad3   :  { %v1184_v1 = vadd.f32 %v1183_v10, %v1182_v63 }
 0xad5   :  { %v1185_v2 = vrot.slane %v1184_v1, 1 }
 0xad7   :  { %v1186_v14 = vadd.f32 %v1185_v2, %v1184_v1 }
 0xad9   :  { %v1265_v12 = vsel %vm169_vm3, %v1186_v14, %v1263_v0 }
 0xada   :  { %1665 = vmatprep.mubr.msk.f32.mxu1 %vm82_vm2, %v1265_v12 }
 0xadb   :  { %1666 = vmatmul.mubr.msk.f32.vlgmr.msra.gmra.mxu1 %vm82_vm2, %v1263_v0 }
 0xb9b   :  { %v1667_v6 = vpop.f32.mrf.mxu1 }
 0xb9c   :  { %v1359_v7 = vadd.f32 %v1667_v6, %v1357_v5 }
 0xb9d   :  { %v1337_v8 = vpop.f32.mrf.mxu1 }
 0xb9e   :  { %v1532_v13 = vmul.f32 -1.442695, %v1359_v7  ;;  %v1346_v15 = vadd.f32 %v1337_v8, %v1258_v4  ;;  %v1358_v16 = vadd.f32 %v1357_v5, %v1337_v8 }
 0xba0   :  { %1739 = vpow2.f32 %v1532_v13  ;;  %v1531_v18 = vmul.f32 -1.442695, %v1358_v16  ;;  %v1530_v38 = vmul.f32 -1.442695, %v1346_v15 }
 0xba1   :  { %1741 = vtanh.f32 %v1346_v15 }
 0xba2   :  { %1743 = vpow2.f32 %v1531_v18 }
 0xbad   :  { %v1740_v19 = vpop.eup %1739 }
 0xbae   :  { %v1742_v20 = vpop.eup %1741  ;;  %v1367_v21 = vadd.f32 1.0, %v1740_v19 }
 0xbaf   :  { %1373 = vrot.lane.b32.xlu0 %v1742_v20, %s1795_s5  ;;  %v1744_v22 = vpop.eup %1743  ;;  %s1767_s5 = scalar_lea.vmem %s1413_s3, 128 }
 0xbb0   :  { %1745 = vrcp.f32 %v1367_v21  ;;  %v1366_v34 = vadd.f32 1.0, %v1744_v22  ;;  %p1768_p5 = scmp.ne.s32.totalorder %s1413_s3, %s1767_s5  ;;  %p1773_p7 = scmp.lt.s32.totalorder %s1767_s5, %s1767_s5 }
 0xbb2   :  { %1747 = vrcp.f32 %v1366_v34  ;;  %p1774_p8 = por %p1773_p7, %p1772_p6 }
 0xbb3   :  { %1749 = vpow2.f32 %v1530_v38 }
 0xbb4   :  { %p1775_p9 = pnand %p1774_p8, %p1768_p5 }
 0xbbd   :  { %v1746_v36 = vpop.eup %1745 }
 0xbbe   :  { %v1378_v23 = vmul.f32 %v1746_v36, %v1263_v0 }
 0xbbf   :  { %v1748_v24 = vpop.eup %1747 }
 0xbc0   :  { %v1377_v25 = vmul.f32 %v1748_v24, %v1263_v0  ;;  %v1382_v27 = vrot.slane %v1378_v23, 1  ;;  %v1750_v39 = vpop.eup %1749 }
 0xbc1   :  { %v1350_v40 = vadd.f32 1.0, %v1750_v39 }
 0xbc2   :  { %v1381_v26 = vrot.slane %v1377_v25, 1 }
 0xbc3   :  { %1751 = vrcp.f32 %v1350_v40 }
 0xbc4   :  { %v1383_v28 = vsel %vm286_vm4, %v1381_v26, %v1382_v27 }
 0xbc5   :  { %v1385_v29 = vsel %vm291_vm5, %v1383_v28, 0.0 }
 0xbc6   :  { %v1386_v30 = vrot.slane %v1385_v29, 4 }
 0xbc8   :  { %v1387_v31 = vadd.f32 %v1386_v30, %v1385_v29 }
 0xbca   :  { %v1388_v32 = vrot.slane %v1387_v31, 2 }
 0xbcc   :  { %v1389_v33 = vadd.f32 %v1388_v32, %v1387_v31 }
 0xbce   :  { %v1390_v35 = vrot.slane %v1389_v33, 1 }
 0xbd0   :  { %v1391_v37 = vadd.f32 %v1390_v35, %v1389_v33  ;;  %v1752_v42 = vpop.eup %1751 }
 0xbd2   :  { %1393 = vrot.lane.b32.xlu1 %v1391_v37, %s1796_s9 }
 0xc21   :  { %v1374_v41 = vpop.permute.xlu0 %1373 }
 0xc22   :  { %v1376_v43 = vmul.f32 %v1752_v42, %v1374_v41 }
 0xc44   :  { %v1394_v44 = vpop.permute.xlu1 %1393 }
 0xc45   :  { %v1396_v45 = vadd.f32 %v1394_v44, %v1376_v43 }
 0xc47   :  { %1753 = vtanh.f32 %v1396_v45 }
 0xc54   :  { %v1754_v46 = vpop.eup %1753 }
 0xc55   :  { %1399 = vrot.lane.b32.xlu0 %v1754_v46, %s1796_s9 }
 0xcc7   :  { %v1400_v47 = vpop.permute.xlu0 %1399 }
 0xcc8   :  { %v1402_v48 = vmul.f32 %v1752_v42, %v1400_v47 }
 0xcca   :  { %v1403_v49 = vsel %vm82_vm2, %v1396_v45, %v1402_v48 }
 0xccb   :  { %v1404_v50 = vsel %vm311_vm6, %v1403_v49, 0.0 }
 0xccc   :  { %1405 = vst [vmem:[#allocation5 + $0x4] sm:$0x1] %v1404_v50 }
 0xccd   :  { %1778 = shalt.err (!%p1775_p9)
}
 0xcce   :  { %1415 = dma.vmem_to_hbm [thread:$0]  %s1413_s3, 128, %s2063_s6, [#allocation6]  }
 0xccf   :  { %1789 = dma.done.wait [#allocation6], 128  }
 0xcd0   :  { %1790 = vsyncadd [#allocation6], 4294967168 }
 0xcd1   :  { %1419 = vsyncpa [#allocation6], 1 }

</bundles_post_ra>
